<compile_context>
chip_gen: v5e
topology: v5e:2x2
jax: 0.10.0
libtpu: 0.0.40
codegen_flags: <defaults>
</compile_context>

<pallas_src>
import functools

import jax
import jax.numpy as jnp
from jax.experimental import pallas as pl
from jax.experimental.pallas import tpu as pltpu


# ----------------------------------------------------------------------------
# Pallas kernel: fused RealNVP flow stack (forward or reverse) on one M-tile.
# ----------------------------------------------------------------------------
def _realnvp_kernel(z_ref, w1_ref, b1_ref, w2t_ref, b2t_ref, w2s_ref, b2s_ref,
                    o_ref, *, num_flows, half, hidden, reverse, write_z1):
    z1 = z_ref[:, :half]                     # [TM, half] f32 — never modified
    z2 = z_ref[:, half:]                     # [TM, half] f32
    z1_bf = z1.astype(jnp.bfloat16)

    # Fused first layers of t(.) and s(.) for ALL flows: one lane-dense MXU call.
    #   h_all = relu(z1 @ [Wt1_0 | Ws1_0 | Wt1_1 | Ws1_1 | ...] + b)
    h = jnp.dot(z1_bf, w1_ref[...], preferred_element_type=jnp.float32)
    h = jnp.maximum(h + b1_ref[...], 0.0)    # [TM, F*2*hidden] f32
    h_bf = h.astype(jnp.bfloat16)

    flow_ids = range(num_flows - 1, -1, -1) if reverse else range(num_flows)
    for f in flow_ids:
        base = f * 2 * hidden                          # static, lane-aligned
        h_t = h_bf[:, base:base + hidden]
        h_s = h_bf[:, base + hidden:base + 2 * hidden]
        shift = jnp.dot(h_t, w2t_ref[f], preferred_element_type=jnp.float32) + b2t_ref[f]
        scale = jnp.dot(h_s, w2s_ref[f], preferred_element_type=jnp.float32) + b2s_ref[f]
        if not reverse:
            z2 = z2 * jnp.exp(scale) + shift
        else:
            z2 = (z2 - shift) * jnp.exp(-scale)

    if write_z1:
        # Non-aliased path: full-width output block.
        o_ref[:, :half] = z1.astype(o_ref.dtype)
        o_ref[:, half:] = z2.astype(o_ref.dtype)
    else:
        # Aliased path: output block is only the z2 half; z1 already lives in the
        # (aliased / copied) output buffer.
        o_ref[...] = z2.astype(o_ref.dtype)


# ----------------------------------------------------------------------------
# Wrapper.
# ----------------------------------------------------------------------------
def _device_kind():
    try:
        return jax.devices()[0].device_kind.lower()
    except Exception:  # pragma: no cover
        return ""


def _is_v7x():
    return "7" in _device_kind()


def _pick_tile(M, tile_m):
    """Batch-tile rows: big tiles for large M; >=2 tiles for small M (megacore)."""
    if M > tile_m:
        return tile_m
    if M >= 16:
        tm = (((M + 1) // 2) + 7) // 8 * 8      # ~half the batch, multiple of 8
        if tm < M:
            return tm
    return M


def realnvp_apply(packed, z, *, reverse=False, tile_m=None, alias_z1=True):
    """Apply the RealNVP flow stack. z: [M, latent] f32 -> [M, latent] f32.

    alias_z1=True donates/aliases z to the output and skips the HBM write-back of
    the unchanged z1 half (callers must not rely on in-place reuse of a donated z).
    """
    M, latent = z.shape
    half, f2h = packed["w1"].shape
    F, hidden, _ = packed["w2t"].shape
    assert latent == 2 * half and f2h == F * 2 * hidden

    if tile_m is None:
        tile_m = 512 if _is_v7x() else 1024      # v7x: 64 MiB VMEM/TC -> cap tile
    TM = _pick_tile(M, tile_m)
    grid = (pl.cdiv(M, TM),)

    kernel = functools.partial(_realnvp_kernel, num_flows=F, half=half,
                               hidden=hidden, reverse=reverse,
                               write_z1=not alias_z1)

    if alias_z1:
        out_spec = pl.BlockSpec((TM, half), lambda i: (i, 1))   # z2 columns only
        io_alias = {0: 0}
        out_bytes = M * half * 4
    else:
        out_spec = pl.BlockSpec((TM, latent), lambda i: (i, 0))
        io_alias = {}
        out_bytes = M * latent * 4

    flops = 8 * F * M * hidden * half            # fused L1 + 2F second-layer matmuls
    weight_bytes = (half * f2h + 2 * F * hidden * half) * 2 \
                   + (f2h + 2 * F * half) * 4
    bytes_accessed = M * latent * 4 + out_bytes + weight_bytes

    vmem_limit = (48 << 20) if _is_v7x() else (64 << 20)

    return pl.pallas_call(
        kernel,
        out_shape=jax.ShapeDtypeStruct((M, latent), jnp.float32),
        grid=grid,
        in_specs=[
            pl.BlockSpec((TM, latent), lambda i: (i, 0)),        # z
            pl.BlockSpec((half, f2h), lambda i: (0, 0)),         # fused W1 (bf16)
            pl.BlockSpec((1, f2h), lambda i: (0, 0)),            # fused b1 (f32)
            pl.BlockSpec((F, hidden, half), lambda i: (0, 0, 0)),  # Wt2
            pl.BlockSpec((F, 1, half), lambda i: (0, 0, 0)),       # bt2
            pl.BlockSpec((F, hidden, half), lambda i: (0, 0, 0)),  # Ws2
            pl.BlockSpec((F, 1, half), lambda i: (0, 0, 0)),       # bs2
        ],
        out_specs=out_spec,
        input_output_aliases=io_alias,
        compiler_params=pltpu.CompilerParams(
            dimension_semantics=("parallel",),
            vmem_limit_bytes=vmem_limit,
        ),
        cost_estimate=pl.CostEstimate(
            flops=flops,
            transcendentals=F * M * half,
            bytes_accessed=bytes_accessed,
        ),
    )(z, packed["w1"], packed["b1"], packed["w2t"], packed["b2t"],
      packed["w2s"], packed["b2s"])


# ----------------------------------------------------------------------------
# Parameters: PyTorch-layout init + one-time packing into kernel-friendly layout.
# ----------------------------------------------------------------------------
def init_params(key, latent_dim=512, hidden_dim=256, num_flows=2):
    """PyTorch-convention parameters: Linear weights are [out, in]."""
    half = latent_dim // 2
    keys = jax.random.split(key, num_flows * 8)
    scale = 0.05

    def w(k, shape):
        return scale * jax.random.normal(k, shape, dtype=jnp.float32)

    flows = []
    for f in range(num_flows):
        ks = keys[f * 8:(f + 1) * 8]
        flows.append({
            "t0_w": w(ks[0], (hidden_dim, half)), "t0_b": w(ks[1], (hidden_dim,)),
            "t2_w": w(ks[2], (half, hidden_dim)), "t2_b": w(ks[3], (half,)),
            "s0_w": w(ks[4], (hidden_dim, half)), "s0_b": w(ks[5], (hidden_dim,)),
            "s2_w": w(ks[6], (half, hidden_dim)), "s2_b": w(ks[7], (half,)),
        })
    return {"flows": flows}


def pack_params(params):
    """One-time repack: [in, out] layout, t/s/all-flow first layers fused, bf16 weights."""
    flows = params["flows"]
    w1 = jnp.concatenate(
        [jnp.concatenate([p["t0_w"].T, p["s0_w"].T], axis=1) for p in flows],
        axis=1)                                                  # [half, F*2H]
    b1 = jnp.concatenate(
        [jnp.concatenate([p["t0_b"], p["s0_b"]], axis=0) for p in flows],
        axis=0)[None, :]                                         # [1, F*2H]
    w2t = jnp.stack([p["t2_w"].T for p in flows])                # [F, H, half]
    b2t = jnp.stack([p["t2_b"][None, :] for p in flows])         # [F, 1, half]
    w2s = jnp.stack([p["s2_w"].T for p in flows])
    b2s = jnp.stack([p["s2_b"][None, :] for p in flows])
    return {
        "w1": w1.astype(jnp.bfloat16),
        "b1": b1.astype(jnp.float32),
        "w2t": w2t.astype(jnp.bfloat16),
        "b2t": b2t.astype(jnp.float32),
        "w2s": w2s.astype(jnp.bfloat16),
        "b2s": b2s.astype(jnp.float32),
    }


# ----------------------------------------------------------------------------
# Pure-JAX f32 reference (mirrors the PyTorch module exactly).
# ----------------------------------------------------------------------------
def _ref_forward(params, z, reverse=False):
    flows = params["flows"]
    order = list(reversed(flows)) if reverse else flows
    for p in order:
        half = z.shape[1] // 2
        z1, z2 = z[:, :half], z[:, half:]
        h_t = jax.nn.relu(z1 @ p["t0_w"].T + p["t0_b"])
        shift = h_t @ p["t2_w"].T + p["t2_b"]
        h_s = jax.nn.relu(z1 @ p["s0_w"].T + p["s0_b"])
        scale = h_s @ p["s2_w"].T + p["s2_b"]
        if not reverse:
            z2 = z2 * jnp.exp(scale) + shift
        else:
            z2 = (z2 - shift) * jnp.exp(-scale)
        z = jnp.concatenate([z1, z2], axis=1)
    return z


# ----------------------------------------------------------------------------
if __name__ == "__main__":
    key = jax.random.PRNGKey(0)
    k_param, k_z, k_z2 = jax.random.split(key, 3)

    latent_dim, hidden_dim, num_flows = 512, 256, 2
    B = 16

    params = init_params(k_param, latent_dim, hidden_dim, num_flows)
    packed = pack_params(params)
    z = jax.random.normal(k_z, (B, latent_dim), dtype=jnp.float32)

    fwd = jax.jit(functools.partial(realnvp_apply, reverse=False))
    rev = jax.jit(functools.partial(realnvp_apply, reverse=True))

    out = fwd(packed, z)
    jax.block_until_ready(out)
    assert out.shape == (B, latent_dim)

    # Forward check vs f32 reference (tolerance accounts for bf16 MXU operands).
    ref = _ref_forward(params, z, reverse=False)
    assert jnp.allclose(out, ref, atol=5e-2, rtol=5e-2), \
        float(jnp.max(jnp.abs(out - ref)))
    # z1 half must pass through untouched (exercises the aliased output path).
    assert jnp.array_equal(out[:, :latent_dim // 2], z[:, :latent_dim // 2])

    # Reverse path check vs reference.
    out_rev = rev(packed, ref)
    jax.block_until_ready(out_rev)
    ref_rev = _ref_forward(params, ref, reverse=True)
    assert jnp.allclose(out_rev, ref_rev, atol=5e-2, rtol=5e-2), \
        float(jnp.max(jnp.abs(out_rev - ref_rev)))

    # Ragged batch (M not a multiple of the tile): no NaN leakage into valid rows.
    z_odd = jax.random.normal(k_z2, (20, latent_dim), dtype=jnp.float32)
    out_odd = fwd(packed, z_odd)
    jax.block_until_ready(out_odd)
    ref_odd = _ref_forward(params, z_odd, reverse=False)
    assert jnp.all(jnp.isfinite(out_odd))
    assert jnp.allclose(out_odd, ref_odd, atol=5e-2, rtol=5e-2), \
        float(jnp.max(jnp.abs(out_odd - ref_odd)))

    print("KERNEL_OK")
</pallas_src>

<mosaic_0001>
module attributes {stable_mosaic.version = 11 : i64} {
  func.func @_realnvp_kernel(%arg0: i32, %arg1: memref<8x512xf32, #tpu.memory_space<vmem>>, %arg2: memref<256x1024xbf16, #tpu.memory_space<vmem>>, %arg3: memref<1x1024xf32, #tpu.memory_space<vmem>>, %arg4: memref<2x256x256xbf16, #tpu.memory_space<vmem>>, %arg5: memref<2x1x256xf32, #tpu.memory_space<vmem>>, %arg6: memref<2x256x256xbf16, #tpu.memory_space<vmem>>, %arg7: memref<2x1x256xf32, #tpu.memory_space<vmem>>, %arg8: memref<8x256xf32, #tpu.memory_space<vmem>>) attributes {dimension_semantics = [#tpu.dimension_semantics<parallel>], iteration_bounds = array<i64: 2>, scalar_prefetch = 0 : i64, scratch_operands = 0 : i64, tpu.core_type = #tpu.core_type<tc>, window_params = [{transform_indices = @transform_0, window_bounds = array<i64: 8, 512>}, {pipeline_mode = #tpu.pipeline_mode<synchronous>, transform_indices = @transform_1, window_bounds = array<i64: 256, 1024>}, {pipeline_mode = #tpu.pipeline_mode<synchronous>, transform_indices = @transform_2, window_bounds = array<i64: 1, 1024>}, {pipeline_mode = #tpu.pipeline_mode<synchronous>, transform_indices = @transform_3, window_bounds = array<i64: 2, 256, 256>}, {pipeline_mode = #tpu.pipeline_mode<synchronous>, transform_indices = @transform_4, window_bounds = array<i64: 2, 1, 256>}, {pipeline_mode = #tpu.pipeline_mode<synchronous>, transform_indices = @transform_5, window_bounds = array<i64: 2, 256, 256>}, {pipeline_mode = #tpu.pipeline_mode<synchronous>, transform_indices = @transform_6, window_bounds = array<i64: 2, 1, 256>}, {transform_indices = @transform_7, window_bounds = array<i64: 8, 256>}]} {
    %c0 = arith.constant 0 : index
    %c0_0 = arith.constant 0 : index
    %0 = vector.load %arg1[%c0, %c0_0] : memref<8x512xf32, #tpu.memory_space<vmem>>, vector<8x256xf32>
    %c0_1 = arith.constant 0 : index
    %c256 = arith.constant 256 : index
    %1 = vector.load %arg1[%c0_1, %c256] : memref<8x512xf32, #tpu.memory_space<vmem>>, vector<8x256xf32>
    %2 = arith.truncf %0 : vector<8x256xf32> to vector<8x256xbf16>
    %c0_2 = arith.constant 0 : index
    %c0_3 = arith.constant 0 : index
    %3 = vector.load %arg2[%c0_2, %c0_3] : memref<256x1024xbf16, #tpu.memory_space<vmem>>, vector<256x1024xbf16>
    %cst = arith.constant dense<0.000000e+00> : vector<8x1024xf32>
    %4 = tpu.matmul %2, %3, %cst {dimension_numbers = #tpu.dot_dimension_numbers<[1], [0], [0], [1], [0, 0, 1, 1], [], []>} : vector<8x256xbf16>, vector<256x1024xbf16>, vector<8x1024xf32> -> vector<8x1024xf32>
    %c0_4 = arith.constant 0 : index
    %c0_5 = arith.constant 0 : index
    %5 = vector.load %arg3[%c0_4, %c0_5] : memref<1x1024xf32, #tpu.memory_space<vmem>>, vector<1x1024xf32>
    %6 = vector.broadcast %5 : vector<1x1024xf32> to vector<8x1024xf32>
    %7 = arith.addf %4, %6 : vector<8x1024xf32>
    %cst_6 = arith.constant 0.000000e+00 : f32
    %8 = vector.broadcast %cst_6 : f32 to vector<8x1024xf32>
    %9 = arith.maximumf %7, %8 : vector<8x1024xf32>
    %10 = arith.truncf %9 : vector<8x1024xf32> to vector<8x1024xbf16>
    %11 = vector.extract_strided_slice %10 {offsets = [0, 0], sizes = [8, 256], strides = [1, 1]} : vector<8x1024xbf16> to vector<8x256xbf16>
    %12 = vector.extract_strided_slice %10 {offsets = [0, 256], sizes = [8, 256], strides = [1, 1]} : vector<8x1024xbf16> to vector<8x256xbf16>
    %c0_7 = arith.constant 0 : index
    %c0_8 = arith.constant 0 : index
    %c0_9 = arith.constant 0 : index
    %13 = vector.load %arg4[%c0_7, %c0_8, %c0_9] : memref<2x256x256xbf16, #tpu.memory_space<vmem>>, vector<1x256x256xbf16>
    %14 = vector.shape_cast %13 : vector<1x256x256xbf16> to vector<256x256xbf16>
    %cst_10 = arith.constant dense<0.000000e+00> : vector<8x256xf32>
    %15 = tpu.matmul %11, %14, %cst_10 {dimension_numbers = #tpu.dot_dimension_numbers<[1], [0], [0], [1], [0, 0, 1, 1], [], []>} : vector<8x256xbf16>, vector<256x256xbf16>, vector<8x256xf32> -> vector<8x256xf32>
    %c0_11 = arith.constant 0 : index
    %c0_12 = arith.constant 0 : index
    %c0_13 = arith.constant 0 : index
    %16 = vector.load %arg5[%c0_11, %c0_12, %c0_13] : memref<2x1x256xf32, #tpu.memory_space<vmem>>, vector<1x1x256xf32>
    %17 = vector.shape_cast %16 : vector<1x1x256xf32> to vector<1x256xf32>
    %18 = vector.broadcast %17 : vector<1x256xf32> to vector<8x256xf32>
    %19 = arith.addf %15, %18 : vector<8x256xf32>
    %c0_14 = arith.constant 0 : index
    %c0_15 = arith.constant 0 : index
    %c0_16 = arith.constant 0 : index
    %20 = vector.load %arg6[%c0_14, %c0_15, %c0_16] : memref<2x256x256xbf16, #tpu.memory_space<vmem>>, vector<1x256x256xbf16>
    %21 = vector.shape_cast %20 : vector<1x256x256xbf16> to vector<256x256xbf16>
    %cst_17 = arith.constant dense<0.000000e+00> : vector<8x256xf32>
    %22 = tpu.matmul %12, %21, %cst_17 {dimension_numbers = #tpu.dot_dimension_numbers<[1], [0], [0], [1], [0, 0, 1, 1], [], []>} : vector<8x256xbf16>, vector<256x256xbf16>, vector<8x256xf32> -> vector<8x256xf32>
    %c0_18 = arith.constant 0 : index
    %c0_19 = arith.constant 0 : index
    %c0_20 = arith.constant 0 : index
    %23 = vector.load %arg7[%c0_18, %c0_19, %c0_20] : memref<2x1x256xf32, #tpu.memory_space<vmem>>, vector<1x1x256xf32>
    %24 = vector.shape_cast %23 : vector<1x1x256xf32> to vector<1x256xf32>
    %25 = vector.broadcast %24 : vector<1x256xf32> to vector<8x256xf32>
    %26 = arith.addf %22, %25 : vector<8x256xf32>
    %27 = math.exp %26 : vector<8x256xf32>
    %28 = arith.mulf %1, %27 : vector<8x256xf32>
    %29 = arith.addf %28, %19 : vector<8x256xf32>
    %30 = vector.extract_strided_slice %10 {offsets = [0, 512], sizes = [8, 256], strides = [1, 1]} : vector<8x1024xbf16> to vector<8x256xbf16>
    %31 = vector.extract_strided_slice %10 {offsets = [0, 768], sizes = [8, 256], strides = [1, 1]} : vector<8x1024xbf16> to vector<8x256xbf16>
    %c1 = arith.constant 1 : index
    %c0_21 = arith.constant 0 : index
    %c0_22 = arith.constant 0 : index
    %32 = vector.load %arg4[%c1, %c0_21, %c0_22] : memref<2x256x256xbf16, #tpu.memory_space<vmem>>, vector<1x256x256xbf16>
    %33 = vector.shape_cast %32 : vector<1x256x256xbf16> to vector<256x256xbf16>
    %cst_23 = arith.constant dense<0.000000e+00> : vector<8x256xf32>
    %34 = tpu.matmul %30, %33, %cst_23 {dimension_numbers = #tpu.dot_dimension_numbers<[1], [0], [0], [1], [0, 0, 1, 1], [], []>} : vector<8x256xbf16>, vector<256x256xbf16>, vector<8x256xf32> -> vector<8x256xf32>
    %c1_24 = arith.constant 1 : index
    %c0_25 = arith.constant 0 : index
    %c0_26 = arith.constant 0 : index
    %35 = vector.load %arg5[%c1_24, %c0_25, %c0_26] : memref<2x1x256xf32, #tpu.memory_space<vmem>>, vector<1x1x256xf32>
    %36 = vector.shape_cast %35 : vector<1x1x256xf32> to vector<1x256xf32>
    %37 = vector.broadcast %36 : vector<1x256xf32> to vector<8x256xf32>
    %38 = arith.addf %34, %37 : vector<8x256xf32>
    %c1_27 = arith.constant 1 : index
    %c0_28 = arith.constant 0 : index
    %c0_29 = arith.constant 0 : index
    %39 = vector.load %arg6[%c1_27, %c0_28, %c0_29] : memref<2x256x256xbf16, #tpu.memory_space<vmem>>, vector<1x256x256xbf16>
    %40 = vector.shape_cast %39 : vector<1x256x256xbf16> to vector<256x256xbf16>
    %cst_30 = arith.constant dense<0.000000e+00> : vector<8x256xf32>
    %41 = tpu.matmul %31, %40, %cst_30 {dimension_numbers = #tpu.dot_dimension_numbers<[1], [0], [0], [1], [0, 0, 1, 1], [], []>} : vector<8x256xbf16>, vector<256x256xbf16>, vector<8x256xf32> -> vector<8x256xf32>
    %c1_31 = arith.constant 1 : index
    %c0_32 = arith.constant 0 : index
    %c0_33 = arith.constant 0 : index
    %42 = vector.load %arg7[%c1_31, %c0_32, %c0_33] : memref<2x1x256xf32, #tpu.memory_space<vmem>>, vector<1x1x256xf32>
    %43 = vector.shape_cast %42 : vector<1x1x256xf32> to vector<1x256xf32>
    %44 = vector.broadcast %43 : vector<1x256xf32> to vector<8x256xf32>
    %45 = arith.addf %41, %44 : vector<8x256xf32>
    %46 = math.exp %45 : vector<8x256xf32>
    %47 = arith.mulf %29, %46 : vector<8x256xf32>
    %48 = arith.addf %47, %38 : vector<8x256xf32>
    %c0_34 = arith.constant 0 : index
    %c0_35 = arith.constant 0 : index
    %49 = vector.load %arg8[%c0_34, %c0_35] : memref<8x256xf32, #tpu.memory_space<vmem>>, vector<8x256xf32>
    tpu.vector_store %arg8[%c0_34, %c0_35], %48 {strides = array<i32>} : memref<8x256xf32, #tpu.memory_space<vmem>>, vector<8x256xf32>,
    return
  }
  func.func @transform_0(%arg0: i32) -> (i32, i32) {
    %c0_i32 = arith.constant 0 : i32
    %c0_i32_0 = arith.constant 0 : i32
    return %arg0, %c0_i32 : i32, i32
  }
  func.func @transform_1(%arg0: i32) -> (i32, i32) {
    %c0_i32 = arith.constant 0 : i32
    %c0_i32_0 = arith.constant 0 : i32
    %c0_i32_1 = arith.constant 0 : i32
    return %c0_i32, %c0_i32_0 : i32, i32
  }
  func.func @transform_2(%arg0: i32) -> (i32, i32) {
    %c0_i32 = arith.constant 0 : i32
    %c0_i32_0 = arith.constant 0 : i32
    %c0_i32_1 = arith.constant 0 : i32
    return %c0_i32, %c0_i32_0 : i32, i32
  }
  func.func @transform_3(%arg0: i32) -> (i32, i32, i32) {
    %c0_i32 = arith.constant 0 : i32
    %c0_i32_0 = arith.constant 0 : i32
    %c0_i32_1 = arith.constant 0 : i32
    %c0_i32_2 = arith.constant 0 : i32
    return %c0_i32, %c0_i32_0, %c0_i32_1 : i32, i32, i32
  }
  func.func @transform_4(%arg0: i32) -> (i32, i32, i32) {
    %c0_i32 = arith.constant 0 : i32
    %c0_i32_0 = arith.constant 0 : i32
    %c0_i32_1 = arith.constant 0 : i32
    %c0_i32_2 = arith.constant 0 : i32
    return %c0_i32, %c0_i32_0, %c0_i32_1 : i32, i32, i32
  }
  func.func @transform_5(%arg0: i32) -> (i32, i32, i32) {
    %c0_i32 = arith.constant 0 : i32
    %c0_i32_0 = arith.constant 0 : i32
    %c0_i32_1 = arith.constant 0 : i32
    %c0_i32_2 = arith.constant 0 : i32
    return %c0_i32, %c0_i32_0, %c0_i32_1 : i32, i32, i32
  }
  func.func @transform_6(%arg0: i32) -> (i32, i32, i32) {
    %c0_i32 = arith.constant 0 : i32
    %c0_i32_0 = arith.constant 0 : i32
    %c0_i32_1 = arith.constant 0 : i32
    %c0_i32_2 = arith.constant 0 : i32
    return %c0_i32, %c0_i32_0, %c0_i32_1 : i32, i32, i32
  }
  func.func @transform_7(%arg0: i32) -> (i32, i32) {
    %c1_i32 = arith.constant 1 : i32
    %c0_i32 = arith.constant 0 : i32
    return %arg0, %c1_i32 : i32, i32
  }
}

</mosaic_0001>

<bundles_post_ra>
// kernel: realnvp_apply.1
= control target key start
LH: loop header
LB: loop body
LE: loop exit
PB: predicated region body
PF: predicated region fallthrough
CT: control target
= control target key end

     0   :  { %s4375_s0 = inlined_call_operand.hbm [shape: f32[16,512], index: 0, kind: input, shape index: {}, may-alias: {0,7}]   ;;  %s4376_s1 = inlined_call_operand.hbm [shape: bf16[256,1024], index: 1, kind: input, shape index: {}]   ;;  %s4377_s2 = inlined_call_operand.vmem [shape: f32[1,1024], index: 2, kind: input, shape index: {}]   ;;  %s4378_s3 = inlined_call_operand.hbm [shape: bf16[2,256,256], index: 3, kind: input, shape index: {}]   ;;  %s4379_s4 = inlined_call_operand.vmem [shape: f32[2,1,256], index: 4, kind: input, shape index: {}]   ;;  %s4380_s5 = inlined_call_operand.hbm [shape: bf16[2,256,256], index: 5, kind: input, shape index: {}]   ;;  %s4381_s6 = inlined_call_operand.vmem [shape: f32[2,1,256], index: 6, kind: input, shape index: {}]   ;;  %s4382_s7 = inlined_call_operand.hbm [shape: f32[16,512], index: 7, kind: output, shape index: {}, may-alias: {0,7}]  }
   0x1   :  { %4383 = sst [smem:[#allocation15_spill]] %s4376_s1 }
   0x2   :  { %12 = vsyncpa [#allocation3], 0 }
   0x3   :  { %14 = vsyncpa [#allocation3 + $0x1], 0 }
   0x4   :  { %15 = vsyncpa [#allocation6], 0 }
   0x5   :  { %16 = vsyncpa [#allocation9], 0 }
   0x6   :  { %17 = vsyncpa [#allocation4], 0 }
   0x7   :  { %19 = vsyncpa [#allocation4 + $0x1], 0  ;;  %s4164_s24 = smov 0   ;;  %s4166_s25 = smov 0  }
   0x8   :  { %s4168_s26 = smov 0   ;;  %s4170_s27 = smov 0  }
   0x9 LB: > { %s4384_s1 = sld [smem:[#allocation15_spill]]  ;;  %s4188_s8 = sadd.s32 4294967295, %s4115_s27   ;;  %s4115_s27 = sphi %s4170_s27, %s4395_s27   ;;  %s4111_s26 = sphi %s4168_s26, %s4394_s26   ;;  %s4107_s25 = sphi %s4166_s25, %s4393_s25   ;;  %s4103_s24 = sphi %s4164_s24, %s4392_s24  }
   0xa   : > { %p2529_p0 = scmp.ge.s32.totalorder %s4115_s27, 1  ;;  %p46_p1 = scmp.eq.s32.totalorder %s4188_s8, 0 }
   0xb   : > { %p208_p2 = scmp.lt.s32.totalorder %s4115_s27, 3  ;;  %s4117_s10 = smov [#allocation5]  }
   0xc   : > { %s221_s11 = sshll.u32 %s4117_s10, 4  ;;  %s236_s14 = sshll.u32 %s4378_s3, 4  ;;  %s222_s11 = int_to_ptr.vmem [resolvable:$true] %s221_s11  ;;  %s237_s14 = int_to_ptr.hbm [resolvable:$true] %s236_s14 }
   0xd   : > { %p4193_p3 = pnand %p2529_p0, %p208_p2  ;;  %s4118_s16 = smov [#allocation7]  }
   0xe   : > { %s238_s17 = sshll.u32 %s4118_s16, 4  ;;  %s4119_s18 = smov 512   ;;  %s239_s17 = int_to_ptr.vmem [resolvable:$true] %s238_s17 }
   0xf   : > { %s219_s30 = sshll.u32 %s4384_s1, 4  ;;  %p3848_p4 = pneg %p4193_p3  ;;  %s220_s30 = int_to_ptr.hbm [resolvable:$true] %s219_s30 }
  0x10   : > { %s4120_s19 = smov 32   ;;  %s4121_s20 = smov 128  }
  0x11   : > { %p4205_p6 = pnand %p3848_p4, %p46_p1  ;;  %s4122_s21 = smov 8  }
  0x12   : > { %s253_s28 = sshll.u32 %s4380_s5, 4  ;;  %s4123_s29 = smov [#allocation8]   ;;  %s254_s28 = int_to_ptr.hbm [resolvable:$true] %s253_s28 }
  0x13   : > { %3851 = dma.hbm_to_vmem [thread:$0]  (!%p4205_p6), %s220_s30, 16384, %s222_s11, [#allocation6], %s4119_s18, %s4119_s18, %s4120_s19  }
  0x14   : > { %3854 = dma.hbm_to_vmem [thread:$0]  (!%p4205_p6), %s237_s14, 8192, %s239_s17, [#allocation6], %s4121_s20, %s4121_s20, %s4122_s21  }
  0x15   : > { %s255_s10 = sshll.u32 %s4123_s29, 4  ;;  %s2528_s30 = sadd.s32 4294967294, %s4115_s27   ;;  %s256_s10 = int_to_ptr.vmem [resolvable:$true] %s255_s10 }
  0x16   : > { %3857 = dma.hbm_to_vmem [thread:$0]  (!%p4205_p6), %s254_s28, 8192, %s256_s10, [#allocation9], %s4121_s20, %s4121_s20, %s4122_s21  }
  0x17   : > { %s4220_s11 = sadd.s32 1, %s4115_s27   ;;  %s32_s12 = sadd.s32 1, %s4111_s26 }
  0x18   : > { %s29_s13 = ssub.s32 %s4115_s27, %s4220_s11  ;;  %p39_p7 = scmp.ne.s32.totalorder %s4111_s26, %s4107_s25 }
  0x19   : > { %p30_p8 = scmp.eq.s32.totalorder %s29_s13, 0  ;;  %p40_p9 = scmp.eq.s32.totalorder %s4115_s27, 0 }
  0x1a   : > { %p45_p10 = scmp.ne.s32.totalorder %s4107_s25, %s4103_s24  ;;  %p195_p11 = scmp.eq.s32.totalorder %s4188_s8, 1 }
  0x1b   : > { %s4232_s14 = scalar_select %p30_p8, %s4111_s26, %s32_s12  }
  0x1c   : > { %p4236_p12 = por %p46_p1, %p45_p10  ;;  %p4240_p13 = por %p195_p11, %p39_p7 }
  0x1d   : > { %p201_p0 = scmp.eq.s32.totalorder %s2528_s30, 1  ;;  %p41_p2 = por %p40_p9, %p39_p7 }
  0x1e   : > { %s272_s17 = sand.u32 1, %s4111_s26   ;;  %p3869_p6 = scmp.lt.s32.totalorder %s4115_s27, 2 }
  0x1f   : > { %p4245_p4 = por %p201_p0, %p45_p10  ;;  %s2534_s19 = sshll.u32 %s272_s17, 5 }
  0x20   : > { %s3574_s20 = sshll.u32 %s4115_s27, 5  ;;  %s276_s29 = scalar_lea.vmem [#allocation2], %s2534_s19 }
  0x21   : > { %s281_s23 = scalar_lea.hbm %s4375_s0, %s3574_s20  ;;  %s285_s10 = sshll.u32 %s276_s29, 4  ;;  %s286_s10 = int_to_ptr.vmem [resolvable:$true] %s285_s10 }
  0x22   : > { %s283_s28 = sshll.u32 %s281_s23, 4  ;;  %p4254_p8 = pnand %p3869_p6, %p41_p2  ;;  %s284_s28 = int_to_ptr.hbm [resolvable:$true] %s283_s28 }
  0x23   : > { %s273_s12 = scalar_lea.sflag [#allocation3], %s272_s17  ;;  %s4011_s13 = sshra.s32 %s284_s28, 4  ;;  %s4012_s13 = int_to_ptr.hbm [resolvable:$true] %s4011_s13 }
  0x24   : > { %s4013_s1 = scalar_lea.hbm %s4012_s13, 32  ;;  %p4015_p9 = pneg %p4254_p8 }
  0x25   : > { %p4014_p7 = scmp.ne.s32.totalorder %s4012_s13, %s4013_s1  ;;  %s4018_s19 = scalar_lea.hbm %s4375_s0, 64 }
  0x26   : > { %p4019_p0 = scmp.lt.s32.totalorder %s4012_s13, %s4375_s0  ;;  %p4020_p2 = scmp.lt.s32.totalorder %s4018_s19, %s4013_s1 }
  0x27   : > { %p4016_p10 = pnand %p4015_p9, %p4014_p7 }
  0x28   : > { %p4021_p6 = por %p4020_p2, %p4019_p0 }
  0x29   : > { %p4017_p11 = pneg %p4016_p10 }
  0x2b   : > { %p4022_p5 = pnand %p4021_p6, %p4017_p11 }
  0x2d   : > { %4025 = shalt.err (!%p4022_p5)
}
  0x2e   : > { %3861 = dma.hbm_to_vmem [thread:$0]  (!%p4254_p8), %s284_s28, 512, %s286_s10, %s273_s12  }
  0x2f   : > { %294 = sbr.rel (%p4193_p3) target bundleno = 485 (0x1e5), region = 48  ;;  %s4271_s17 = sand.u32 (!%p4193_p3), 1, %s4107_s25  }
  0x30   : > { %s2538_s29 = sshll.u32 (!%p4193_p3), %s4271_s17, 5  ;;  %s297_s20 = scalar_lea.sflag (!%p4193_p3), [#allocation3], %s4271_s17 }
  0x31   : > { %s4275_s21 = scalar_lea.vmem (!%p4193_p3), [#allocation2], %s2538_s29 }
  0x34   : > { %4086 = dma.done.wait (%p4236_p12), %s297_s20, 512  }
  0x35   : > { %4088 = vsyncadd (%p4236_p12), %s297_s20, 4294966784 }
  0x36   : > { %4090 = dma.done.wait (%p46_p1), [#allocation6], 24576  }
  0x37   : > { %4092 = vsyncadd (%p46_p1), [#allocation6], 4294942720 }
  0x38   : > { %4094 = dma.done.wait (%p46_p1), [#allocation9], 8192  }
  0x39   : > { %4096 = vsyncadd (%p46_p1), [#allocation9], 4294959104  ;;  %v2769_v0 = vld [vmem:[#allocation5 + $0x1c0] sm:$0xf]  ;;  %v3631_v5 = vld [vmem:[#allocation5 + $0x1c4] sm:$0xf] }
  0x3a   : > { %v3635_v1 = vld [vmem:[#allocation5 + $0x1dc] sm:$0xf0]  ;;  %v2771_v6 = vld [vmem:[#allocation5 + $0x1e0] sm:$0xf0]  ;;  %s3831_s23 = sshll.u32 %s4188_s8, 5  ;;  %s2542_s29 = sshll.u32 %s4271_s17, 4 }
  0x3b   : > { %v3025_v2 = vld [vmem:[#allocation5 + $0x3c0] sm:$0xf]  ;;  %v2770_v3 = vor.u32 %v3635_v1, %v2769_v0  ;;  %v2774_v8 = vor.u32 %v3631_v5, %v2771_v6  ;;  %v3695_v9 = vld [vmem:[#allocation5 + $0x3c4] sm:$0xf]  ;;  %s2472_s9 = scalar_lea.hbm %s4382_s7, %s3831_s23  ;;  %s2410_s10 = scalar_lea.sflag [#allocation4], %s4271_s17 }
  0x3c   : > { %v3699_v4 = vld [vmem:[#allocation5 + $0x3dc] sm:$0xf0]  ;;  %v3027_v10 = vld [vmem:[#allocation5 + $0x3e0] sm:$0xf0]  ;;  %s2473_s8 = scalar_lea.hbm %s2472_s9, 16  ;;  %s4061_s22 = scalar_lea.hbm %s4382_s7, 64 }
  0x3d   : > { %v3026_v7 = vor.u32 %v3699_v4, %v3025_v2  ;;  %v2737_v11 = vld [vmem:[#allocation5 + $0x180] sm:$0xf]  ;;  %1139 = vmatpush.bf16.msra.mxu0 %v2770_v3  ;;  %v3030_v12 = vor.u32 %v3695_v9, %v3027_v10  ;;  %1165 = vmatpush.bf16.msra.mxu2 %v2774_v8  ;;  %v3623_v18 = vld [vmem:[#allocation5 + $0x184] sm:$0xf]  ;;  %s2426_s28 = sshll.u32 %s2473_s8, 4  ;;  %s2427_s28 = int_to_ptr.hbm [resolvable:$true] %s2426_s28 }
  0x3e   : > { %v3627_v13 = vld [vmem:[#allocation5 + $0x19c] sm:$0xf0]  ;;  %v2739_v19 = vld [vmem:[#allocation5 + $0x1a0] sm:$0xf0]  ;;  %s4055_s30 = sshra.s32 %s2427_s28, 4  ;;  %s4056_s30 = int_to_ptr.hbm [resolvable:$true] %s4055_s30 }
  0x3f   : > { %v2993_v14 = vld [vmem:[#allocation5 + $0x380] sm:$0xf]  ;;  %1152 = vmatpush.bf16.msra.mxu1 %v3026_v7  ;;  %v2738_v16 = vor.u32 %v3627_v13, %v2737_v11  ;;  %v3687_v20 = vld [vmem:[#allocation5 + $0x384] sm:$0xf]  ;;  %1178 = vmatpush.bf16.msra.mxu3 %v3030_v12  ;;  %v2742_v21 = vor.u32 %v3623_v18, %v2739_v19  ;;  %s4057_s12 = scalar_lea.hbm %s4056_s30, 16  ;;  %p4062_p12 = scmp.lt.s32.totalorder %s4056_s30, %s4382_s7 }
  0x40   : > { %v3691_v15 = vld [vmem:[#allocation5 + $0x39c] sm:$0xf0]  ;;  %v2995_v22 = vld [vmem:[#allocation5 + $0x3a0] sm:$0xf0]  ;;  %p4058_p1 = scmp.ne.s32.totalorder %s4056_s30, %s4057_s12  ;;  %p4063_p8 = scmp.lt.s32.totalorder %s4061_s22, %s4057_s12 }
  0x41   : > { %v2994_v17 = vor.u32 %v3691_v15, %v2993_v14  ;;  %v2705_v23 = vld [vmem:[#allocation5 + $0x140] sm:$0xf]  ;;  %v2998_v25 = vor.u32 %v3687_v20, %v2995_v22  ;;  %v3615_v28 = vld [vmem:[#allocation5 + $0x144] sm:$0xf]  ;;  %1140 = vmatpush.bf16.msra.mxu0 %v2738_v16  ;;  %1166 = vmatpush.bf16.msra.mxu2 %v2742_v21 }
  0x42   : > { %v3619_v24 = vld [vmem:[#allocation5 + $0x15c] sm:$0xf0]  ;;  %v2707_v30 = vld [vmem:[#allocation5 + $0x160] sm:$0xf0]  ;;  %p4059_p3 = pnand %p4058_p1, %p4240_p13  ;;  %p4064_p7 = por %p4063_p8, %p4062_p12 }
  0x43   : > { %v2961_v26 = vld [vmem:[#allocation5 + $0x340] sm:$0xf]  ;;  %v2706_v29 = vor.u32 %v3619_v24, %v2705_v23  ;;  %v3679_v31 = vld [vmem:[#allocation5 + $0x344] sm:$0xf]  ;;  %1153 = vmatpush.bf16.msra.mxu1 %v2994_v17  ;;  %v2710_v34 = vor.u32 %v3615_v28, %v2707_v30  ;;  %1179 = vmatpush.bf16.msra.mxu3 %v2998_v25  ;;  %v2777_v28 = vld [vmem:[#allocation5 + $0x1c8] sm:$0xf] }
  0x44   : > { %v3683_v27 = vld [vmem:[#allocation5 + $0x35c] sm:$0xf0]  ;;  %v2963_v32 = vld [vmem:[#allocation5 + $0x360] sm:$0xf0]  ;;  %v3033_v30 = vld [vmem:[#allocation5 + $0x3c8] sm:$0xf]  ;;  %p4060_p5 = pneg %p4059_p3 }
  0x45   : > { %v2962_v33 = vor.u32 %v3683_v27, %v2961_v26  ;;  %v2673_v35 = vld [vmem:[#allocation5 + $0x100] sm:$0xf]  ;;  %v2966_v38 = vor.u32 %v3679_v31, %v2963_v32  ;;  %v3607_v40 = vld [vmem:[#allocation5 + $0x104] sm:$0xf]  ;;  %1141 = vmatpush.bf16.msra.mxu0 %v2706_v29  ;;  %1167 = vmatpush.bf16.msra.mxu2 %v2710_v34  ;;  %v3636_v29 = vld [vmem:[#allocation5 + $0x1e4] sm:$0xf0] }
  0x46   : > { %v3611_v36 = vld [vmem:[#allocation5 + $0x11c] sm:$0xf0]  ;;  %v2675_v41 = vld [vmem:[#allocation5 + $0x120] sm:$0xf0]  ;;  %v3700_v32 = vld [vmem:[#allocation5 + $0x3e4] sm:$0xf0]  ;;  %p4065_p9 = pnand %p4064_p7, %p4060_p5 }
  0x47   : > { %v2929_v37 = vld [vmem:[#allocation5 + $0x300] sm:$0xf]  ;;  %v3671_v42 = vld [vmem:[#allocation5 + $0x304] sm:$0xf]  ;;  %v2674_v44 = vor.u32 %v3611_v36, %v2673_v35  ;;  %1154 = vmatpush.bf16.msra.mxu1 %v2962_v33  ;;  %v2678_v46 = vor.u32 %v3607_v40, %v2675_v41  ;;  %1180 = vmatpush.bf16.msra.mxu3 %v2966_v38  ;;  %v3632_v33 = vld [vmem:[#allocation5 + $0x1cc] sm:$0xf]  ;;  %v2778_v40 = vor.u32 %v3636_v29, %v2777_v28 }
  0x48   : > { %v3675_v39 = vld [vmem:[#allocation5 + $0x31c] sm:$0xf0]  ;;  %v2931_v43 = vld [vmem:[#allocation5 + $0x320] sm:$0xf0]  ;;  %v2779_v34 = vld [vmem:[#allocation5 + $0x1e8] sm:$0xf0]  ;;  %v3034_v41 = vor.u32 %v3700_v32, %v3033_v30 }
  0x49   : > { %v2930_v45 = vor.u32 %v3675_v39, %v2929_v37  ;;  %v2641_v47 = vld [vmem:[#allocation5 + $0xc0] sm:$0xf]  ;;  %v2934_v50 = vor.u32 %v3671_v42, %v2931_v43  ;;  %v3599_v52 = vld [vmem:[#allocation5 + $0xc4] sm:$0xf]  ;;  %1142 = vmatpush.bf16.msra.mxu0 %v2674_v44  ;;  %1168 = vmatpush.bf16.msra.mxu2 %v2678_v46  ;;  %v3696_v37 = vld [vmem:[#allocation5 + $0x3cc] sm:$0xf]  ;;  %v2782_v42 = vor.u32 %v3632_v33, %v2779_v34 }
  0x4a   : > { %v3603_v48 = vld [vmem:[#allocation5 + $0xdc] sm:$0xf0]  ;;  %v2643_v53 = vld [vmem:[#allocation5 + $0xe0] sm:$0xf0]  ;;  %v3035_v38 = vld [vmem:[#allocation5 + $0x3e8] sm:$0xf0] }
  0x4b   : > { %v2897_v49 = vld [vmem:[#allocation5 + $0x2c0] sm:$0xf]  ;;  %v3663_v54 = vld [vmem:[#allocation5 + $0x2c4] sm:$0xf]  ;;  %v2642_v56 = vor.u32 %v3603_v48, %v2641_v47  ;;  %1155 = vmatpush.bf16.msra.mxu1 %v2930_v45  ;;  %v2646_v58 = vor.u32 %v3599_v52, %v2643_v53  ;;  %1181 = vmatpush.bf16.msra.mxu3 %v2934_v50  ;;  %v2745_v43 = vld [vmem:[#allocation5 + $0x188] sm:$0xf]  ;;  %v3038_v46 = vor.u32 %v3696_v37, %v3035_v38 }
  0x4c   : > { %v3667_v51 = vld [vmem:[#allocation5 + $0x2dc] sm:$0xf0]  ;;  %v2899_v55 = vld [vmem:[#allocation5 + $0x2e0] sm:$0xf0]  ;;  %v3628_v44 = vld [vmem:[#allocation5 + $0x1a4] sm:$0xf0] }
  0x4d   : > { %v2898_v57 = vor.u32 %v3667_v51, %v2897_v49  ;;  %v2609_v59 = vld [vmem:[#allocation5 + $0x80] sm:$0xf]  ;;  %v2902_v62 = vor.u32 %v3663_v54, %v2899_v55  ;;  %v3591_v0 = vld [vmem:[#allocation5 + $0x84] sm:$0xf]  ;;  %1143 = vmatpush.bf16.msra.mxu0 %v2642_v56  ;;  %1169 = vmatpush.bf16.msra.mxu2 %v2646_v58  ;;  %v3001_v45 = vld [vmem:[#allocation5 + $0x388] sm:$0xf]  ;;  %v2746_v53 = vor.u32 %v3628_v44, %v2745_v43 }
  0x4e   : > { %v3595_v60 = vld [vmem:[#allocation5 + $0x9c] sm:$0xf0]  ;;  %v2611_v1 = vld [vmem:[#allocation5 + $0xa0] sm:$0xf0]  ;;  %v3692_v47 = vld [vmem:[#allocation5 + $0x3a4] sm:$0xf0] }
  0x4f   : > { %v2865_v61 = vld [vmem:[#allocation5 + $0x280] sm:$0xf]  ;;  %v3655_v2 = vld [vmem:[#allocation5 + $0x284] sm:$0xf]  ;;  %v2610_v4 = vor.u32 %v3595_v60, %v2609_v59  ;;  %1156 = vmatpush.bf16.msra.mxu1 %v2898_v57  ;;  %v2614_v6 = vor.u32 %v3591_v0, %v2611_v1  ;;  %1182 = vmatpush.bf16.msra.mxu3 %v2902_v62  ;;  %v3624_v48 = vld [vmem:[#allocation5 + $0x18c] sm:$0xf]  ;;  %v3002_v56 = vor.u32 %v3692_v47, %v3001_v45 }
  0x50   : > { %v3659_v63 = vld [vmem:[#allocation5 + $0x29c] sm:$0xf0]  ;;  %v2867_v3 = vld [vmem:[#allocation5 + $0x2a0] sm:$0xf0]  ;;  %v2747_v49 = vld [vmem:[#allocation5 + $0x1a8] sm:$0xf0] }
  0x51   : > { %v2866_v5 = vor.u32 %v3659_v63, %v2865_v61  ;;  %v2577_v7 = vld [vmem:[#allocation5 + $0x40] sm:$0xf]  ;;  %v2870_v10 = vor.u32 %v3655_v2, %v2867_v3  ;;  %v3583_v12 = vld [vmem:[#allocation5 + $0x44] sm:$0xf]  ;;  %1144 = vmatpush.bf16.msra.mxu0 %v2610_v4  ;;  %1170 = vmatpush.bf16.msra.mxu2 %v2614_v6  ;;  %v3688_v50 = vld [vmem:[#allocation5 + $0x38c] sm:$0xf]  ;;  %v2750_v57 = vor.u32 %v3624_v48, %v2747_v49 }
  0x52   : > { %v3587_v8 = vld [vmem:[#allocation5 + $0x5c] sm:$0xf0]  ;;  %v2579_v13 = vld [vmem:[#allocation5 + $0x60] sm:$0xf0]  ;;  %v3003_v51 = vld [vmem:[#allocation5 + $0x3a8] sm:$0xf0] }
  0x53   : > { %v2833_v9 = vld [vmem:[#allocation5 + $0x240] sm:$0xf]  ;;  %v3647_v14 = vld [vmem:[#allocation5 + $0x244] sm:$0xf]  ;;  %v2578_v16 = vor.u32 %v3587_v8, %v2577_v7  ;;  %1157 = vmatpush.bf16.msra.mxu1 %v2866_v5  ;;  %v2582_v20 = vor.u32 %v3583_v12, %v2579_v13  ;;  %1183 = vmatpush.bf16.msra.mxu3 %v2870_v10  ;;  %v2713_v54 = vld [vmem:[#allocation5 + $0x148] sm:$0xf]  ;;  %v3006_v61 = vor.u32 %v3688_v50, %v3003_v51 }
  0x54   : > { %v3651_v11 = vld [vmem:[#allocation5 + $0x25c] sm:$0xf0]  ;;  %v2835_v15 = vld [vmem:[#allocation5 + $0x260] sm:$0xf0]  ;;  %v3620_v58 = vld [vmem:[#allocation5 + $0x164] sm:$0xf0] }
  0x55   : > { %v2545_v17 = vld [vmem:[#allocation5] sm:$0xf]  ;;  %v2834_v19 = vor.u32 %v3651_v11, %v2833_v9  ;;  %v3575_v23 = vld [vmem:[#allocation5 + $0x4] sm:$0xf]  ;;  %v2838_v24 = vor.u32 %v3647_v14, %v2835_v15  ;;  %1145 = vmatpush.bf16.msra.mxu0 %v2578_v16  ;;  %1171 = vmatpush.bf16.msra.mxu2 %v2582_v20  ;;  %v2969_v59 = vld [vmem:[#allocation5 + $0x348] sm:$0xf]  ;;  %v2714_v4 = vor.u32 %v3620_v58, %v2713_v54 }
  0x56   : > { %v3579_v18 = vld [vmem:[#allocation5 + $0x1c] sm:$0xf0]  ;;  %v2547_v25 = vld [vmem:[#allocation5 + $0x20] sm:$0xf0]  ;;  %v3684_v60 = vld [vmem:[#allocation5 + $0x364] sm:$0xf0] }
  0x57   : > { %v2801_v21 = vld [vmem:[#allocation5 + $0x200] sm:$0xf]  ;;  %v3639_v26 = vld [vmem:[#allocation5 + $0x204] sm:$0xf]  ;;  %v2546_v31 = vor.u32 %v3579_v18, %v2545_v17  ;;  %1158 = vmatpush.bf16.msra.mxu1 %v2834_v19  ;;  %v2550_v36 = vor.u32 %v3575_v23, %v2547_v25  ;;  %1184 = vmatpush.bf16.msra.mxu3 %v2838_v24  ;;  %v3616_v62 = vld [vmem:[#allocation5 + $0x14c] sm:$0xf]  ;;  %v2970_v5 = vor.u32 %v3684_v60, %v2969_v59 }
  0x58   : > { %v3643_v22 = vld [vmem:[#allocation5 + $0x21c] sm:$0xf0]  ;;  %v2803_v27 = vld [vmem:[#allocation5 + $0x220] sm:$0xf0]  ;;  %v2715_v63 = vld [vmem:[#allocation5 + $0x168] sm:$0xf0] }
  0x59   : > { %v2802_v35 = vor.u32 %v3643_v22, %v2801_v21  ;;  %v2806_v39 = vor.u32 %v3639_v26, %v2803_v27  ;;  %1146 = vmatpush.bf16.msra.mxu0 %v2546_v31  ;;  %1172 = vmatpush.bf16.msra.mxu2 %v2550_v36  ;;  %v347_v52 = vld [vmem:[%s4275_s21] sm:$0xff]  ;;  %v348_v0 = vld [vmem:[%s4275_s21 + $0x8] sm:$0xff]  ;;  %v2718_v6 = vor.u32 %v3616_v62, %v2715_v63 }
  0x5a   : > { %v4290_v55 = vpack.c.bf16 %v347_v52, %v347_v52  ;;  %v3680_v1 = vld [vmem:[#allocation5 + $0x34c] sm:$0xf]  ;;  %v4294_v3 = vpack.c.bf16 %v348_v0, %v348_v0  ;;  %v2681_v7 = vld [vmem:[#allocation5 + $0x108] sm:$0xf] }
  0x5b   : > { %1159 = vmatpush.bf16.msra.mxu1 %v2802_v35  ;;  %1185 = vmatpush.bf16.msra.mxu3 %v2806_v39  ;;  %v2971_v2 = vld [vmem:[#allocation5 + $0x368] sm:$0xf0]  ;;  %v3612_v8 = vld [vmem:[#allocation5 + $0x124] sm:$0xf0] }
  0x5c   : > { %1173 = vmatmul.bf16.vlgmr.msra.gmra.mxu2 %v4290_v55  ;;  %1147 = vmatmul.bf16.vlgmr.msra.gmra.mxu0 %v4290_v55  ;;  %v2937_v9 = vld [vmem:[#allocation5 + $0x308] sm:$0xf]  ;;  %v2974_v10 = vor.u32 %v3680_v1, %v2971_v2  ;;  %v3608_v12 = vld [vmem:[#allocation5 + $0x10c] sm:$0xf]  ;;  %v2682_v16 = vor.u32 %v3612_v8, %v2681_v7  ;;  %v2785_v1 = vld [vmem:[#allocation5 + $0x1d0] sm:$0xf] }
  0x5d   : > { %1191 = vmatpush.bf16.msrb.mxu0 %v2778_v40  ;;  %1217 = vmatpush.bf16.msrb.mxu2 %v2782_v42  ;;  %v3676_v11 = vld [vmem:[#allocation5 + $0x324] sm:$0xf0]  ;;  %v2683_v13 = vld [vmem:[#allocation5 + $0x128] sm:$0xf0]  ;;  %v3637_v2 = vld [vmem:[#allocation5 + $0x1ec] sm:$0xf0] }
  0x5e   : > { %1160 = vmatmul.bf16.vlgmr.msra.gmra.mxu1 %v4294_v3  ;;  %v3672_v14 = vld [vmem:[#allocation5 + $0x30c] sm:$0xf]  ;;  %1186 = vmatmul.bf16.vlgmr.msra.gmra.mxu3 %v4294_v3  ;;  %v2938_v17 = vor.u32 %v3676_v11, %v2937_v9  ;;  %v2686_v18 = vor.u32 %v3608_v12, %v2683_v13  ;;  %v2649_v19 = vld [vmem:[#allocation5 + $0xc8] sm:$0xf]  ;;  %v3633_v7 = vld [vmem:[#allocation5 + $0x1d4] sm:$0xf] }
  0x5f   : > { %1204 = vmatpush.bf16.msrb.mxu1 %v3034_v41  ;;  %1230 = vmatpush.bf16.msrb.mxu3 %v3038_v46  ;;  %v2939_v15 = vld [vmem:[#allocation5 + $0x328] sm:$0xf0]  ;;  %v3604_v20 = vld [vmem:[#allocation5 + $0xe4] sm:$0xf0]  ;;  %v2787_v8 = vld [vmem:[#allocation5 + $0x1f0] sm:$0xf0] }
  0x60   : > { %v2905_v21 = vld [vmem:[#allocation5 + $0x2c8] sm:$0xf]  ;;  %v2942_v22 = vor.u32 %v3672_v14, %v2939_v15  ;;  %v3600_v24 = vld [vmem:[#allocation5 + $0xcc] sm:$0xf]  ;;  %v2650_v28 = vor.u32 %v3604_v20, %v2649_v19  ;;  %v3697_v11 = vld [vmem:[#allocation5 + $0x3d4] sm:$0xf]  ;;  %v2786_v14 = vor.u32 %v3637_v2, %v2785_v1 }
  0x61   : > { %1192 = vmatpush.bf16.msrb.mxu0 %v2746_v53  ;;  %1218 = vmatpush.bf16.msrb.mxu2 %v2750_v57  ;;  %v3668_v23 = vld [vmem:[#allocation5 + $0x2e4] sm:$0xf0]  ;;  %v2651_v25 = vld [vmem:[#allocation5 + $0xe8] sm:$0xf0]  ;;  %v3043_v12 = vld [vmem:[#allocation5 + $0x3f0] sm:$0xf0] }
  0x62   : > { %v3664_v26 = vld [vmem:[#allocation5 + $0x2cc] sm:$0xf]  ;;  %v2906_v29 = vor.u32 %v3668_v23, %v2905_v21  ;;  %v2654_v30 = vor.u32 %v3600_v24, %v2651_v25  ;;  %v2617_v31 = vld [vmem:[#allocation5 + $0x88] sm:$0xf]  ;;  %v3009_v19 = vld [vmem:[#allocation5 + $0x390] sm:$0xf]  ;;  %v3046_v20 = vor.u32 %v3697_v11, %v3043_v12 }
  0x63   : > { %1205 = vmatpush.bf16.msrb.mxu1 %v3002_v56  ;;  %1231 = vmatpush.bf16.msrb.mxu3 %v3006_v61  ;;  %v2907_v27 = vld [vmem:[#allocation5 + $0x2e8] sm:$0xf0]  ;;  %v3596_v32 = vld [vmem:[#allocation5 + $0xa4] sm:$0xf0]  ;;  %v3693_v21 = vld [vmem:[#allocation5 + $0x3ac] sm:$0xf0] }
  0x64   : > { %v2873_v33 = vld [vmem:[#allocation5 + $0x288] sm:$0xf]  ;;  %v2910_v34 = vor.u32 %v3664_v26, %v2907_v27  ;;  %v3592_v36 = vld [vmem:[#allocation5 + $0x8c] sm:$0xf]  ;;  %v2618_v40 = vor.u32 %v3596_v32, %v2617_v31  ;;  %v2755_v23 = vld [vmem:[#allocation5 + $0x1b0] sm:$0xf0]  ;;  %v3010_v27 = vor.u32 %v3693_v21, %v3009_v19 }
  0x65   : > { %1193 = vmatpush.bf16.msrb.mxu0 %v2714_v4  ;;  %1219 = vmatpush.bf16.msrb.mxu2 %v2718_v6  ;;  %v3660_v35 = vld [vmem:[#allocation5 + $0x2a4] sm:$0xf0]  ;;  %v2619_v37 = vld [vmem:[#allocation5 + $0xa8] sm:$0xf0]  ;;  %v3041_v4 = vld [vmem:[#allocation5 + $0x3d0] sm:$0xf] }
  0x66   : > { %v3656_v38 = vld [vmem:[#allocation5 + $0x28c] sm:$0xf]  ;;  %v2874_v41 = vor.u32 %v3660_v35, %v2873_v33  ;;  %v2622_v42 = vor.u32 %v3592_v36, %v2619_v37  ;;  %v2585_v43 = vld [vmem:[#allocation5 + $0x48] sm:$0xf]  ;;  %v3701_v6 = vld [vmem:[#allocation5 + $0x3ec] sm:$0xf0] }
  0x67   : > { %1206 = vmatpush.bf16.msrb.mxu1 %v2970_v5  ;;  %1232 = vmatpush.bf16.msrb.mxu3 %v2974_v10  ;;  %v2875_v39 = vld [vmem:[#allocation5 + $0x2a8] sm:$0xf0]  ;;  %v3588_v44 = vld [vmem:[#allocation5 + $0x64] sm:$0xf0]  ;;  %v3042_v15 = vor.u32 %v3701_v6, %v3041_v4  ;;  %v3689_v24 = vld [vmem:[#allocation5 + $0x394] sm:$0xf] }
  0x68   : > { %v2841_v45 = vld [vmem:[#allocation5 + $0x248] sm:$0xf]  ;;  %v2878_v46 = vor.u32 %v3656_v38, %v2875_v39  ;;  %v3584_v48 = vld [vmem:[#allocation5 + $0x4c] sm:$0xf]  ;;  %v2586_v52 = vor.u32 %v3588_v44, %v2585_v43  ;;  %v3011_v25 = vld [vmem:[#allocation5 + $0x3b0] sm:$0xf0] }
  0x69   : > { %1194 = vmatpush.bf16.msrb.mxu0 %v2682_v16  ;;  %1220 = vmatpush.bf16.msrb.mxu2 %v2686_v18  ;;  %v3652_v47 = vld [vmem:[#allocation5 + $0x264] sm:$0xf0]  ;;  %v2587_v49 = vld [vmem:[#allocation5 + $0x68] sm:$0xf0]  ;;  %v2790_v16 = vor.u32 %v3633_v7, %v2787_v8  ;;  %v3629_v18 = vld [vmem:[#allocation5 + $0x1ac] sm:$0xf0]  ;;  %v3014_v32 = vor.u32 %v3689_v24, %v3011_v25 }
  0x6a   : > { %v3648_v50 = vld [vmem:[#allocation5 + $0x24c] sm:$0xf]  ;;  %v2553_v53 = vld [vmem:[#allocation5 + $0x8] sm:$0xf]  ;;  %v2842_v56 = vor.u32 %v3652_v47, %v2841_v45  ;;  %v2590_v57 = vor.u32 %v3584_v48, %v2587_v49  ;;  %v2977_v31 = vld [vmem:[#allocation5 + $0x350] sm:$0xf] }
  0x6b   : > { %1207 = vmatpush.bf16.msrb.mxu1 %v2938_v17  ;;  %1233 = vmatpush.bf16.msrb.mxu3 %v2942_v22  ;;  %v2843_v51 = vld [vmem:[#allocation5 + $0x268] sm:$0xf0]  ;;  %v3580_v54 = vld [vmem:[#allocation5 + $0x24] sm:$0xf0]  ;;  %v2753_v17 = vld [vmem:[#allocation5 + $0x190] sm:$0xf] }
  0x6c   : > { %v2809_v58 = vld [vmem:[#allocation5 + $0x208] sm:$0xf]  ;;  %v3576_v60 = vld [vmem:[#allocation5 + $0xc] sm:$0xf]  ;;  %v2846_v61 = vor.u32 %v3648_v50, %v2843_v51  ;;  %v2554_v5 = vor.u32 %v3580_v54, %v2553_v53  ;;  %v3625_v22 = vld [vmem:[#allocation5 + $0x194] sm:$0xf]  ;;  %v2754_v26 = vor.u32 %v3629_v18, %v2753_v17 }
  0x6d   : > { %1195 = vmatpush.bf16.msrb.mxu0 %v2650_v28  ;;  %1221 = vmatpush.bf16.msrb.mxu2 %v2654_v30  ;;  %v3644_v59 = vld [vmem:[#allocation5 + $0x224] sm:$0xf0]  ;;  %v2555_v62 = vld [vmem:[#allocation5 + $0x28] sm:$0xf0]  ;;  %v2758_v28 = vor.u32 %v3625_v22, %v2755_v23  ;;  %v3621_v30 = vld [vmem:[#allocation5 + $0x16c] sm:$0xf0] }
  0x6e   : > { %v3640_v63 = vld [vmem:[#allocation5 + $0x20c] sm:$0xf]  ;;  %v2810_v9 = vor.u32 %v3644_v59, %v2809_v58  ;;  %v2558_v10 = vor.u32 %v3576_v60, %v2555_v62  ;;  %v3685_v33 = vld [vmem:[#allocation5 + $0x36c] sm:$0xf0]  ;;  %v2723_v35 = vld [vmem:[#allocation5 + $0x170] sm:$0xf0] }
  0x6f   : > { %1208 = vmatpush.bf16.msrb.mxu1 %v2906_v29  ;;  %1234 = vmatpush.bf16.msrb.mxu3 %v2910_v34  ;;  %v2811_v0 = vld [vmem:[#allocation5 + $0x228] sm:$0xf0]  ;;  %v2721_v29 = vld [vmem:[#allocation5 + $0x150] sm:$0xf]  ;;  %v3617_v34 = vld [vmem:[#allocation5 + $0x154] sm:$0xf]  ;;  %v2978_v39 = vor.u32 %v3685_v33, %v2977_v31 }
  0x70   : > { %v2814_v13 = vor.u32 %v3640_v63, %v2811_v0  ;;  %v3681_v36 = vld [vmem:[#allocation5 + $0x354] sm:$0xf]  ;;  %v2722_v38 = vor.u32 %v3621_v30, %v2721_v29  ;;  %v2945_v43 = vld [vmem:[#allocation5 + $0x310] sm:$0xf] }
  0x71   : > { %1196 = vmatpush.bf16.msrb.mxu0 %v2618_v40  ;;  %1222 = vmatpush.bf16.msrb.mxu2 %v2622_v42  ;;  %v2979_v37 = vld [vmem:[#allocation5 + $0x370] sm:$0xf0]  ;;  %v2726_v40 = vor.u32 %v3617_v34, %v2723_v35  ;;  %v3613_v42 = vld [vmem:[#allocation5 + $0x12c] sm:$0xf0] }
  0x72   : > { %v2982_v44 = vor.u32 %v3681_v36, %v2979_v37  ;;  %v3677_v45 = vld [vmem:[#allocation5 + $0x32c] sm:$0xf0]  ;;  %v2691_v47 = vld [vmem:[#allocation5 + $0x130] sm:$0xf0]  ;;  %v2793_v36 = vld [vmem:[#allocation5 + $0x1d8] sm:$0xf] }
  0x73   : > { %1209 = vmatpush.bf16.msrb.mxu1 %v2874_v41  ;;  %1235 = vmatpush.bf16.msrb.mxu3 %v2878_v46  ;;  %v2689_v41 = vld [vmem:[#allocation5 + $0x110] sm:$0xf]  ;;  %v3609_v46 = vld [vmem:[#allocation5 + $0x114] sm:$0xf]  ;;  %v2946_v51 = vor.u32 %v3677_v45, %v2945_v43  ;;  %v3638_v37 = vld [vmem:[#allocation5 + $0x1f4] sm:$0xf0] }
  0x74   : > { %v3673_v48 = vld [vmem:[#allocation5 + $0x314] sm:$0xf]  ;;  %v2690_v50 = vor.u32 %v3613_v42, %v2689_v41  ;;  %v2657_v53 = vld [vmem:[#allocation5 + $0xd0] sm:$0xf]  ;;  %v3634_v41 = vld [vmem:[#allocation5 + $0x1dc] sm:$0xf] }
  0x75   : > { %1197 = vmatpush.bf16.msrb.mxu0 %v2586_v52  ;;  %1223 = vmatpush.bf16.msrb.mxu2 %v2590_v57  ;;  %v2947_v49 = vld [vmem:[#allocation5 + $0x330] sm:$0xf0]  ;;  %v2694_v52 = vor.u32 %v3609_v46, %v2691_v47  ;;  %v3605_v54 = vld [vmem:[#allocation5 + $0xec] sm:$0xf0]  ;;  %v2795_v42 = vld [vmem:[#allocation5 + $0x1f8] sm:$0xf0] }
  0x76   : > { %v2950_v57 = vor.u32 %v3673_v48, %v2947_v49  ;;  %v3669_v58 = vld [vmem:[#allocation5 + $0x2ec] sm:$0xf0]  ;;  %v3601_v59 = vld [vmem:[#allocation5 + $0xd4] sm:$0xf]  ;;  %v2658_v63 = vor.u32 %v3605_v54, %v2657_v53  ;;  %v3698_v45 = vld [vmem:[#allocation5 + $0x3dc] sm:$0xf]  ;;  %v2794_v48 = vor.u32 %v3638_v37, %v2793_v36 }
  0x77   : > { %1210 = vmatpush.bf16.msrb.mxu1 %v2842_v56  ;;  %1236 = vmatpush.bf16.msrb.mxu3 %v2846_v61  ;;  %v2913_v56 = vld [vmem:[#allocation5 + $0x2d0] sm:$0xf]  ;;  %v2659_v60 = vld [vmem:[#allocation5 + $0xf0] sm:$0xf0]  ;;  %v3051_v46 = vld [vmem:[#allocation5 + $0x3f8] sm:$0xf0] }
  0x78   : > { %v3665_v61 = vld [vmem:[#allocation5 + $0x2d4] sm:$0xf]  ;;  %v2914_v0 = vor.u32 %v3669_v58, %v2913_v56  ;;  %v2662_v1 = vor.u32 %v3601_v59, %v2659_v60  ;;  %v2625_v2 = vld [vmem:[#allocation5 + $0x90] sm:$0xf]  ;;  %v3017_v53 = vld [vmem:[#allocation5 + $0x398] sm:$0xf]  ;;  %v3054_v54 = vor.u32 %v3698_v45, %v3051_v46 }
  0x79   : > { %1198 = vmatpush.bf16.msrb.mxu0 %v2554_v5  ;;  %1224 = vmatpush.bf16.msrb.mxu2 %v2558_v10  ;;  %v2915_v62 = vld [vmem:[#allocation5 + $0x2f0] sm:$0xf0]  ;;  %v3597_v4 = vld [vmem:[#allocation5 + $0xac] sm:$0xf0]  ;;  %v3694_v56 = vld [vmem:[#allocation5 + $0x3b4] sm:$0xf0] }
  0x7a   : > { %v2881_v5 = vld [vmem:[#allocation5 + $0x290] sm:$0xf]  ;;  %v2918_v6 = vor.u32 %v3665_v61, %v2915_v62  ;;  %v3593_v8 = vld [vmem:[#allocation5 + $0x94] sm:$0xf]  ;;  %v2626_v12 = vor.u32 %v3597_v4, %v2625_v2  ;;  %v2763_v58 = vld [vmem:[#allocation5 + $0x1b8] sm:$0xf0]  ;;  %v3018_v62 = vor.u32 %v3694_v56, %v3017_v53 }
  0x7b   : > { %1211 = vmatpush.bf16.msrb.mxu1 %v2810_v9  ;;  %1237 = vmatpush.bf16.msrb.mxu3 %v2814_v13  ;;  %v3661_v7 = vld [vmem:[#allocation5 + $0x2ac] sm:$0xf0]  ;;  %v2627_v9 = vld [vmem:[#allocation5 + $0xb0] sm:$0xf0]  ;;  %v3690_v59 = vld [vmem:[#allocation5 + $0x39c] sm:$0xf] }
  0x7c   : > { %1225 = vmatmul.bf16.vlgmr.msrb.gmra.mxu2 %v4290_v55  ;;  %1199 = vmatmul.bf16.vlgmr.msrb.gmra.mxu0 %v4290_v55  ;;  %v3657_v10 = vld [vmem:[#allocation5 + $0x294] sm:$0xf]  ;;  %v2882_v13 = vor.u32 %v3661_v7, %v2881_v5  ;;  %v2849_v17 = vld [vmem:[#allocation5 + $0x250] sm:$0xf]  ;;  %v3019_v60 = vld [vmem:[#allocation5 + $0x3b8] sm:$0xf0] }
  0x7d   : > { %1243 = vmatpush.bf16.msra.mxu0 %v2786_v14  ;;  %1269 = vmatpush.bf16.msra.mxu2 %v2790_v16  ;;  %v2883_v11 = vld [vmem:[#allocation5 + $0x2b0] sm:$0xf0]  ;;  %v2630_v14 = vor.u32 %v3593_v8, %v2627_v9  ;;  %v3589_v16 = vld [vmem:[#allocation5 + $0x6c] sm:$0xf0]  ;;  %v2985_v2 = vld [vmem:[#allocation5 + $0x358] sm:$0xf]  ;;  %v3022_v4 = vor.u32 %v3690_v59, %v3019_v60 }
  0x7e   : > { %1238 = vmatmul.bf16.vlgmr.msrb.gmra.mxu3 %v4294_v3  ;;  %1212 = vmatmul.bf16.vlgmr.msrb.gmra.mxu1 %v4294_v3  ;;  %v2886_v18 = vor.u32 %v3657_v10, %v2883_v11  ;;  %v3653_v19 = vld [vmem:[#allocation5 + $0x26c] sm:$0xf0]  ;;  %v2595_v21 = vld [vmem:[#allocation5 + $0x70] sm:$0xf0]  ;;  %v3686_v5 = vld [vmem:[#allocation5 + $0x374] sm:$0xf0] }
  0x7f   : > { %1256 = vmatpush.bf16.msra.mxu1 %v3042_v15  ;;  %1282 = vmatpush.bf16.msra.mxu3 %v3046_v20  ;;  %v2593_v15 = vld [vmem:[#allocation5 + $0x50] sm:$0xf]  ;;  %v3585_v20 = vld [vmem:[#allocation5 + $0x54] sm:$0xf]  ;;  %v2731_v7 = vld [vmem:[#allocation5 + $0x178] sm:$0xf0]  ;;  %v2986_v11 = vor.u32 %v3686_v5, %v2985_v2 }
  0x80   : > { %v3649_v22 = vld [vmem:[#allocation5 + $0x254] sm:$0xf]  ;;  %v2594_v24 = vor.u32 %v3589_v16, %v2593_v15  ;;  %v2561_v25 = vld [vmem:[#allocation5 + $0x10] sm:$0xf]  ;;  %v3682_v8 = vld [vmem:[#allocation5 + $0x35c] sm:$0xf] }
  0x81   : > { %1244 = vmatpush.bf16.msra.mxu0 %v2754_v26  ;;  %1270 = vmatpush.bf16.msra.mxu2 %v2758_v28  ;;  %v2851_v23 = vld [vmem:[#allocation5 + $0x270] sm:$0xf0]  ;;  %v3581_v26 = vld [vmem:[#allocation5 + $0x2c] sm:$0xf0]  ;;  %v2598_v28 = vor.u32 %v3585_v20, %v2595_v21  ;;  %v2987_v9 = vld [vmem:[#allocation5 + $0x378] sm:$0xf0] }
  0x82   : > { %v2817_v29 = vld [vmem:[#allocation5 + $0x210] sm:$0xf]  ;;  %v3577_v31 = vld [vmem:[#allocation5 + $0x14] sm:$0xf]  ;;  %v2953_v15 = vld [vmem:[#allocation5 + $0x318] sm:$0xf]  ;;  %v2990_v16 = vor.u32 %v3682_v8, %v2987_v9 }
  0x83   : > { %1257 = vmatpush.bf16.msra.mxu1 %v3010_v27  ;;  %1283 = vmatpush.bf16.msra.mxu3 %v3014_v32  ;;  %v2850_v27 = vor.u32 %v3653_v19, %v2849_v17  ;;  %v3645_v30 = vld [vmem:[#allocation5 + $0x22c] sm:$0xf0]  ;;  %v2854_v32 = vor.u32 %v3649_v22, %v2851_v23  ;;  %v2563_v33 = vld [vmem:[#allocation5 + $0x30] sm:$0xf0]  ;;  %v3678_v17 = vld [vmem:[#allocation5 + $0x334] sm:$0xf0] }
  0x84   : > { %v3641_v34 = vld [vmem:[#allocation5 + $0x214] sm:$0xf]  ;;  %v2818_v43 = vor.u32 %v3645_v30, %v2817_v29  ;;  %v2699_v19 = vld [vmem:[#allocation5 + $0x138] sm:$0xf0]  ;;  %v2954_v23 = vor.u32 %v3678_v17, %v2953_v15  ;;  %v3670_v29 = vld [vmem:[#allocation5 + $0x2f4] sm:$0xf0] }
  0x85   : > { %1245 = vmatpush.bf16.msra.mxu0 %v2722_v38  ;;  %1271 = vmatpush.bf16.msra.mxu2 %v2726_v40  ;;  %v2819_v35 = vld [vmem:[#allocation5 + $0x230] sm:$0xf0]  ;;  %v3049_v38 = vld [vmem:[#allocation5 + $0x3d8] sm:$0xf]  ;;  %v3674_v20 = vld [vmem:[#allocation5 + $0x31c] sm:$0xf] }
  0x86   : > { %v3702_v40 = vld [vmem:[#allocation5 + $0x3f4] sm:$0xf0]  ;;  %v2822_v47 = vor.u32 %v3641_v34, %v2819_v35  ;;  %v2955_v21 = vld [vmem:[#allocation5 + $0x338] sm:$0xf0]  ;;  %v3113_v8 = vld [vmem:[#allocation7 + $0x70] sm:$0xf] }
  0x87   : > { %1258 = vmatpush.bf16.msra.mxu1 %v2978_v39  ;;  %1284 = vmatpush.bf16.msra.mxu3 %v2982_v44  ;;  %v2562_v39 = vor.u32 %v3581_v26, %v2561_v25  ;;  %v2566_v44 = vor.u32 %v3577_v31, %v2563_v33  ;;  %v3050_v49 = vor.u32 %v3702_v40, %v3049_v38  ;;  %v2665_v25 = vld [vmem:[#allocation5 + $0xd8] sm:$0xf]  ;;  %v3602_v30 = vld [vmem:[#allocation5 + $0xdc] sm:$0xf]  ;;  %v3717_v17 = vld [vmem:[#allocation7 + $0x74] sm:$0xf] }
  0x88   : > { %v3606_v26 = vld [vmem:[#allocation5 + $0xf4] sm:$0xf0]  ;;  %v2667_v31 = vld [vmem:[#allocation5 + $0xf8] sm:$0xf0] }
  0x89   : > { %1246 = vmatpush.bf16.msra.mxu0 %v2690_v50  ;;  %1272 = vmatpush.bf16.msra.mxu2 %v2694_v52  ;;  %v2798_v50 = vor.u32 %v3634_v41, %v2795_v42  ;;  %v3630_v52 = vld [vmem:[#allocation5 + $0x1b4] sm:$0xf0]  ;;  %v2923_v33 = vld [vmem:[#allocation5 + $0x2f8] sm:$0xf0]  ;;  %v2666_v34 = vor.u32 %v3606_v26, %v2665_v25  ;;  %v2670_v36 = vor.u32 %v3602_v30, %v2667_v31  ;;  %v3732_v25 = vld [vmem:[#allocation7 + $0xe4] sm:$0xf0] }
  0x8a   : > { %v2633_v37 = vld [vmem:[#allocation5 + $0x98] sm:$0xf]  ;;  %v3594_v42 = vld [vmem:[#allocation5 + $0x9c] sm:$0xf]  ;;  %v3107_v30 = vld [vmem:[#allocation7 + $0x68] sm:$0xf0] }
  0x8b   : > { %1259 = vmatpush.bf16.msra.mxu1 %v2946_v51  ;;  %1285 = vmatpush.bf16.msra.mxu3 %v2950_v57  ;;  %v2761_v51 = vld [vmem:[#allocation5 + $0x198] sm:$0xf]  ;;  %v3626_v57 = vld [vmem:[#allocation5 + $0x19c] sm:$0xf]  ;;  %v3731_v31 = vld [vmem:[#allocation7 + $0xe4] sm:$0xf] }
  0x8c   : > { %v2762_v61 = vor.u32 %v3630_v52, %v2761_v51  ;;  %v3598_v38 = vld [vmem:[#allocation5 + $0xb4] sm:$0xf0]  ;;  %v2891_v45 = vld [vmem:[#allocation5 + $0x2b8] sm:$0xf0] }
  0x8d   : > { %1247 = vmatpush.bf16.msra.mxu0 %v2658_v63  ;;  %1273 = vmatpush.bf16.msra.mxu2 %v2662_v1  ;;  %v2766_v63 = vor.u32 %v3626_v57, %v2763_v58  ;;  %v3622_v1 = vld [vmem:[#allocation5 + $0x174] sm:$0xf0]  ;;  %v2634_v46 = vor.u32 %v3598_v38, %v2633_v37  ;;  %v2603_v56 = vld [vmem:[#allocation5 + $0x78] sm:$0xf0] }
  0x8e   : > { %v3662_v41 = vld [vmem:[#allocation5 + $0x2b4] sm:$0xf0]  ;;  %v3650_v57 = vld [vmem:[#allocation5 + $0x25c] sm:$0xf] }
  0x8f   : > { %1260 = vmatpush.bf16.msra.mxu1 %v2914_v0  ;;  %1286 = vmatpush.bf16.msra.mxu3 %v2918_v6  ;;  %v2729_v0 = vld [vmem:[#allocation5 + $0x158] sm:$0xf]  ;;  %v3618_v6 = vld [vmem:[#allocation5 + $0x15c] sm:$0xf] }
  0x90   : > { %v2730_v10 = vor.u32 %v3622_v1, %v2729_v0  ;;  %v2857_v51 = vld [vmem:[#allocation5 + $0x258] sm:$0xf]  ;;  %v2859_v58 = vld [vmem:[#allocation5 + $0x278] sm:$0xf0] }
  0x91   : > { %1248 = vmatpush.bf16.msra.mxu0 %v2626_v12  ;;  %1274 = vmatpush.bf16.msra.mxu2 %v2630_v14  ;;  %v2734_v12 = vor.u32 %v3618_v6, %v2731_v7  ;;  %v3614_v14 = vld [vmem:[#allocation5 + $0x134] sm:$0xf0]  ;;  %v2862_v2 = vor.u32 %v3650_v57, %v2859_v58  ;;  %v2571_v5 = vld [vmem:[#allocation5 + $0x38] sm:$0xf0]  ;;  %v3081_v57 = vld [vmem:[#allocation7 + $0x30] sm:$0xf] }
  0x92   : > { %v3654_v53 = vld [vmem:[#allocation5 + $0x274] sm:$0xf0]  ;;  %v3642_v6 = vld [vmem:[#allocation5 + $0x21c] sm:$0xf] }
  0x93   : > { %1261 = vmatpush.bf16.msra.mxu1 %v2882_v13  ;;  %1287 = vmatpush.bf16.msra.mxu3 %v2886_v18  ;;  %v2697_v13 = vld [vmem:[#allocation5 + $0x118] sm:$0xf]  ;;  %v3610_v18 = vld [vmem:[#allocation5 + $0x11c] sm:$0xf] }
  0x94   : > { %v2698_v22 = vor.u32 %v3614_v14, %v2697_v13  ;;  %v2569_v60 = vld [vmem:[#allocation5 + $0x18] sm:$0xf]  ;;  %v2827_v7 = vld [vmem:[#allocation5 + $0x238] sm:$0xf0] }
  0x95   : > { %1249 = vmatpush.bf16.msra.mxu0 %v2594_v24  ;;  %1275 = vmatpush.bf16.msra.mxu2 %v2598_v28  ;;  %v2702_v24 = vor.u32 %v3610_v18, %v2699_v19  ;;  %v2958_v28 = vor.u32 %v3674_v20, %v2955_v21  ;;  %v2825_v0 = vld [vmem:[#allocation5 + $0x218] sm:$0xf]  ;;  %v2830_v15 = vor.u32 %v3642_v6, %v2827_v7  ;;  %v3115_v18 = vld [vmem:[#allocation7 + $0x78] sm:$0xf0]  ;;  %v3733_v19 = vld [vmem:[#allocation7 + $0xf4] sm:$0xf] }
  0x96   : > { %v3646_v1 = vld [vmem:[#allocation5 + $0x234] sm:$0xf0]  ;;  %v3179_v21 = vld [vmem:[#allocation7 + $0xf8] sm:$0xf0]  ;;  %v3118_v26 = vor.u32 %v3717_v17, %v3115_v18  ;;  %v3073_v6 = vld [vmem:[#allocation7 + $0x20] sm:$0xf] }
  0x97   : > { %1262 = vmatpush.bf16.msra.mxu1 %v2850_v27  ;;  %1288 = vmatpush.bf16.msra.mxu3 %v2854_v32  ;;  %v2921_v27 = vld [vmem:[#allocation5 + $0x2d8] sm:$0xf]  ;;  %v3666_v32 = vld [vmem:[#allocation5 + $0x2dc] sm:$0xf]  ;;  %v2826_v13 = vor.u32 %v3646_v1, %v2825_v0  ;;  %v3709_v0 = vld [vmem:[#allocation7 + $0x34] sm:$0xf] }
  0x98   : > { %v2922_v35 = vor.u32 %v3670_v29, %v2921_v27  ;;  %v2926_v40 = vor.u32 %v3666_v32, %v2923_v33  ;;  %v3718_v9 = vld [vmem:[#allocation7 + $0x74] sm:$0xf0]  ;;  %v3182_v27 = vor.u32 %v3733_v19, %v3179_v21  ;;  %v3715_v29 = vld [vmem:[#allocation7 + $0x64] sm:$0xf]  ;;  %v3171_v33 = vld [vmem:[#allocation7 + $0xe8] sm:$0xf0] }
  0x99   : > { %1250 = vmatpush.bf16.msra.mxu0 %v2562_v39  ;;  %1276 = vmatpush.bf16.msra.mxu2 %v2566_v44  ;;  %v2889_v39 = vld [vmem:[#allocation5 + $0x298] sm:$0xf]  ;;  %v3658_v44 = vld [vmem:[#allocation5 + $0x29c] sm:$0xf]  ;;  %v3110_v38 = vor.u32 %v3715_v29, %v3107_v30  ;;  %v3708_v7 = vld [vmem:[#allocation7 + $0x24] sm:$0xf0] }
  0x9a   : > { %v2894_v52 = vor.u32 %v3658_v44, %v2891_v45  ;;  %v3730_v37 = vld [vmem:[#allocation7 + $0xd4] sm:$0xf0]  ;;  %v3163_v45 = vld [vmem:[#allocation7 + $0xd8] sm:$0xf0]  ;;  %v3139_v17 = vld [vmem:[#allocation7 + $0xa8] sm:$0xf0] }
  0x9b   : > { %1263 = vmatpush.bf16.msra.mxu1 %v2818_v43  ;;  %1289 = vmatpush.bf16.msra.mxu3 %v2822_v47  ;;  %v2635_v43 = vld [vmem:[#allocation5 + $0xb8] sm:$0xf0]  ;;  %v2890_v47 = vor.u32 %v3662_v41, %v2889_v39  ;;  %v3174_v39 = vor.u32 %v3731_v31, %v3171_v33  ;;  %v3713_v41 = vld [vmem:[#allocation7 + $0x54] sm:$0xf]  ;;  %v3710_v58 = vld [vmem:[#allocation7 + $0x34] sm:$0xf0] }
  0x9c   : > { %1277 = vmatmul.bf16.vlgmr.msra.gmra.mxu2 %v4290_v55  ;;  %1251 = vmatmul.bf16.vlgmr.msra.gmra.mxu0 %v4290_v55  ;;  %v3083_v1 = vld [vmem:[#allocation7 + $0x38] sm:$0xf0]  ;;  %v3065_v18 = vld [vmem:[#allocation7 + $0x10] sm:$0xf]  ;;  %v3706_v19 = vld [vmem:[#allocation7 + $0x14] sm:$0xf0] }
  0x9d   : > { %1295 = vmatpush.bf16.msrb.mxu0 %v2794_v48  ;;  %1321 = vmatpush.bf16.msrb.mxu2 %v2798_v50  ;;  %v2638_v48 = vor.u32 %v3594_v42, %v2635_v43  ;;  %v3590_v50 = vld [vmem:[#allocation5 + $0x74] sm:$0xf0]  ;;  %v3099_v42 = vld [vmem:[#allocation7 + $0x58] sm:$0xf0]  ;;  %v3729_v43 = vld [vmem:[#allocation7 + $0xd4] sm:$0xf] }
  0x9e   : > { %1290 = vmatmul.bf16.vlgmr.msra.gmra.mxu3 %v4294_v3  ;;  %1264 = vmatmul.bf16.vlgmr.msra.gmra.mxu1 %v4294_v3  ;;  %v3722_v21 = vld [vmem:[#allocation7 + $0x94] sm:$0xf0]  ;;  %v3057_v30 = vld [vmem:[#allocation7] sm:$0xf]  ;;  %v3704_v31 = vld [vmem:[#allocation7 + $0x4] sm:$0xf0] }
  0x9f   : > { %1308 = vmatpush.bf16.msrb.mxu1 %v3050_v49  ;;  %1334 = vmatpush.bf16.msrb.mxu3 %v3054_v54  ;;  %v2601_v49 = vld [vmem:[#allocation5 + $0x58] sm:$0xf]  ;;  %v3586_v54 = vld [vmem:[#allocation5 + $0x5c] sm:$0xf]  ;;  %v3720_v33 = vld [vmem:[#allocation7 + $0x84] sm:$0xf0] }
  0xa0   : > { %v2602_v59 = vor.u32 %v3590_v50, %v2601_v49  ;;  %v3102_v49 = vor.u32 %v3713_v41, %v3099_v42  ;;  %v3058_v41 = vor.u32 %v3704_v31, %v3057_v30  ;;  %v3059_v42 = vld [vmem:[#allocation7 + $0x8] sm:$0xf0]  ;;  %v3742_v30 = vld [vmem:[#allocation8 + $0x34] sm:$0xf0]  ;;  %v3273_v31 = vld [vmem:[#allocation8 + $0xb0] sm:$0xf] }
  0xa1   : > { %1296 = vmatpush.bf16.msrb.mxu0 %v2762_v61  ;;  %1322 = vmatpush.bf16.msrb.mxu2 %v2766_v63  ;;  %v2858_v61 = vor.u32 %v3654_v53, %v2857_v51  ;;  %v3582_v63 = vld [vmem:[#allocation5 + $0x34] sm:$0xf0]  ;;  %v3711_v51 = vld [vmem:[#allocation7 + $0x44] sm:$0xf] }
  0xa2   : > { %v3727_v53 = vld [vmem:[#allocation7 + $0xc4] sm:$0xf] }
  0xa3   : > { %1309 = vmatpush.bf16.msrb.mxu1 %v3018_v62  ;;  %1335 = vmatpush.bf16.msrb.mxu3 %v3022_v4  ;;  %v2606_v62 = vor.u32 %v3586_v54, %v2603_v56  ;;  %v3578_v4 = vld [vmem:[#allocation5 + $0x1c] sm:$0xf]  ;;  %v3155_v56 = vld [vmem:[#allocation7 + $0xc8] sm:$0xf0] }
  0xa4   : > { %v2574_v14 = vor.u32 %v3578_v4, %v2571_v5  ;;  %v3147_v5 = vld [vmem:[#allocation7 + $0xb8] sm:$0xf0] }
  0xa5   : > { %1297 = vmatpush.bf16.msrb.mxu0 %v2730_v10  ;;  %1323 = vmatpush.bf16.msrb.mxu2 %v2734_v12  ;;  %v2570_v10 = vor.u32 %v3582_v63, %v2569_v60  ;;  %v3734_v12 = vld [vmem:[#allocation7 + $0xf4] sm:$0xf0]  ;;  %v3082_v63 = vor.u32 %v3710_v58, %v3081_v57 }
  0xa6   : > { %v3726_v60 = vld [vmem:[#allocation7 + $0xb4] sm:$0xf0] }
  0xa7   : > { %1310 = vmatpush.bf16.msrb.mxu1 %v2986_v11  ;;  %1336 = vmatpush.bf16.msrb.mxu3 %v2990_v16  ;;  %v3177_v11 = vld [vmem:[#allocation7 + $0xf0] sm:$0xf]  ;;  %v3114_v16 = vor.u32 %v3718_v9, %v3113_v8  ;;  %v3137_v8 = vld [vmem:[#allocation7 + $0xa0] sm:$0xf]  ;;  %v3724_v9 = vld [vmem:[#allocation7 + $0xa4] sm:$0xf0] }
  0xa8   : > { %v3178_v20 = vor.u32 %v3734_v12, %v3177_v11  ;;  %v3074_v12 = vor.u32 %v3708_v7, %v3073_v6  ;;  %v4314_v6 = vld [vmem:[%s4377_s2] sm:$0xff] }
  0xa9   : > { %1298 = vmatpush.bf16.msrb.mxu0 %v2698_v22  ;;  %1324 = vmatpush.bf16.msrb.mxu2 %v2702_v24  ;;  %v3105_v22 = vld [vmem:[#allocation7 + $0x60] sm:$0xf] }
  0xaa   : > { %v3169_v24 = vld [vmem:[#allocation7 + $0xe0] sm:$0xf] }
  0xab   : > { %1311 = vmatpush.bf16.msrb.mxu1 %v2954_v23  ;;  %1337 = vmatpush.bf16.msrb.mxu3 %v2958_v28  ;;  %v3716_v23 = vld [vmem:[#allocation7 + $0x64] sm:$0xf0]  ;;  %v3170_v32 = vor.u32 %v3732_v25, %v3169_v24  ;;  %v3066_v25 = vor.u32 %v3706_v19, %v3065_v18  ;;  %v483_v19 = vperm.slane %v4314_v6, 0 }
  0xac   : > { %v3106_v28 = vor.u32 %v3716_v23, %v3105_v22  ;;  %v3705_v23 = vld [vmem:[#allocation7 + $0x14] sm:$0xf]  ;;  %v3760_v18 = vld [vmem:[#allocation8 + $0xc4] sm:$0xf0] }
  0xad   : > { %1299 = vmatpush.bf16.msrb.mxu0 %v2666_v34  ;;  %1325 = vmatpush.bf16.msrb.mxu2 %v2670_v36  ;;  %v3097_v34 = vld [vmem:[#allocation7 + $0x50] sm:$0xf] }
  0xae   : > { %v3161_v36 = vld [vmem:[#allocation7 + $0xd0] sm:$0xf] }
  0xaf   : > { %1312 = vmatpush.bf16.msrb.mxu1 %v2922_v35  ;;  %1338 = vmatpush.bf16.msrb.mxu3 %v2926_v40  ;;  %v3714_v35 = vld [vmem:[#allocation7 + $0x54] sm:$0xf0]  ;;  %v3162_v44 = vor.u32 %v3730_v37, %v3161_v36  ;;  %v3703_v37 = vld [vmem:[#allocation7 + $0x4] sm:$0xf] }
  0xb0   : > { %v3098_v40 = vor.u32 %v3714_v35, %v3097_v34  ;;  %v3241_v34 = vld [vmem:[#allocation8 + $0x70] sm:$0xf]  ;;  %v3750_v35 = vld [vmem:[#allocation8 + $0x74] sm:$0xf0] }
  0xb1   : > { %1300 = vmatpush.bf16.msrb.mxu0 %v2634_v46  ;;  %1326 = vmatpush.bf16.msrb.mxu2 %v2638_v48  ;;  %v3089_v46 = vld [vmem:[#allocation7 + $0x40] sm:$0xf] }
  0xb2   : > { %v3153_v48 = vld [vmem:[#allocation7 + $0xc0] sm:$0xf] }
  0xb3   : > { %1313 = vmatpush.bf16.msrb.mxu1 %v2890_v47  ;;  %1339 = vmatpush.bf16.msrb.mxu3 %v2894_v52  ;;  %v3712_v47 = vld [vmem:[#allocation7 + $0x44] sm:$0xf0]  ;;  %v3091_v52 = vld [vmem:[#allocation7 + $0x48] sm:$0xf0] }
  0xb4   : > { %v3090_v50 = vor.u32 %v3712_v47, %v3089_v46  ;;  %v3242_v46 = vor.u32 %v3750_v35, %v3241_v34  ;;  %v3749_v47 = vld [vmem:[#allocation8 + $0x74] sm:$0xf] }
  0xb5   : > { %1301 = vmatpush.bf16.msrb.mxu0 %v2602_v59  ;;  %1327 = vmatpush.bf16.msrb.mxu2 %v2606_v62  ;;  %v3145_v59 = vld [vmem:[#allocation7 + $0xb0] sm:$0xf]  ;;  %v3158_v62 = vor.u32 %v3727_v53, %v3155_v56  ;;  %v3297_v53 = vld [vmem:[#allocation8 + $0xe0] sm:$0xf]  ;;  %v3741_v35 = vld [vmem:[#allocation8 + $0x34] sm:$0xf] }
  0xb6   : > { %v3146_v4 = vor.u32 %v3726_v60, %v3145_v59  ;;  %v3747_v60 = vld [vmem:[#allocation8 + $0x64] sm:$0xf] }
  0xb7   : > { %1314 = vmatpush.bf16.msrb.mxu1 %v2858_v61  ;;  %1340 = vmatpush.bf16.msrb.mxu3 %v2862_v2  ;;  %v3094_v61 = vor.u32 %v3711_v51, %v3091_v52  ;;  %v3725_v2 = vld [vmem:[#allocation7 + $0xb4] sm:$0xf]  ;;  %v3748_v51 = vld [vmem:[#allocation8 + $0x64] sm:$0xf0]  ;;  %v3062_v52 = vor.u32 %v3703_v37, %v3059_v42  ;;  %v3275_v42 = vld [vmem:[#allocation8 + $0xb8] sm:$0xf0] }
  0xb8   : > { %v3150_v11 = vor.u32 %v3725_v2, %v3147_v5  ;;  %v3746_v2 = vld [vmem:[#allocation8 + $0x54] sm:$0xf0] }
  0xb9   : > { %1302 = vmatpush.bf16.msrb.mxu0 %v2570_v10  ;;  %1328 = vmatpush.bf16.msrb.mxu2 %v2574_v14  ;;  %v3086_v10 = vor.u32 %v3709_v0, %v3083_v1  ;;  %v3075_v14 = vld [vmem:[#allocation7 + $0x28] sm:$0xf0]  ;;  %v3225_v1 = vld [vmem:[#allocation8 + $0x50] sm:$0xf]  ;;  %v3762_v5 = vld [vmem:[#allocation8 + $0xd4] sm:$0xf0] }
  0xba   : > { %v3299_v0 = vld [vmem:[#allocation8 + $0xe8] sm:$0xf0] }
  0xbb   : > { %1315 = vmatpush.bf16.msrb.mxu1 %v2826_v13  ;;  %1341 = vmatpush.bf16.msrb.mxu3 %v2830_v15  ;;  %v3707_v13 = vld [vmem:[#allocation7 + $0x24] sm:$0xf] }
  0xbc   : > { %1303 = vmatmul.bf16.vlgmr.msrb.gmra.mxu0 %v4290_v55  ;;  %1329 = vmatmul.bf16.vlgmr.msrb.gmra.mxu2 %v4290_v55  ;;  %v3728_v55 = vld [vmem:[#allocation7 + $0xc4] sm:$0xf0]  ;;  %v3723_v15 = vld [vmem:[#allocation7 + $0xa4] sm:$0xf]  ;;  %v3078_v22 = vor.u32 %v3707_v13, %v3075_v14  ;;  %v3291_v14 = vld [vmem:[#allocation8 + $0xd8] sm:$0xf0] }
  0xbd   : > { %1564 = vmatpush.bf16.msra.mxu0 %v3114_v16  ;;  %1590 = vmatpush.bf16.msra.mxu2 %v3118_v26  ;;  %v3154_v54 = vor.u32 %v3728_v55, %v3153_v48  ;;  %v3138_v16 = vor.u32 %v3724_v9, %v3137_v8  ;;  %v3142_v24 = vor.u32 %v3723_v15, %v3139_v17  ;;  %v3067_v26 = vld [vmem:[#allocation7 + $0x18] sm:$0xf0]  ;;  %v3765_v55 = vld [vmem:[#allocation8 + $0xf4] sm:$0xf]  ;;  %v3217_v15 = vld [vmem:[#allocation8 + $0x40] sm:$0xf] }
  0xbe   : > { %1316 = vmatmul.bf16.vlgmr.msrb.gmra.mxu1 %v4294_v3  ;;  %1342 = vmatmul.bf16.vlgmr.msrb.gmra.mxu3 %v4294_v3  ;;  %v3166_v3 = vor.u32 %v3729_v43, %v3163_v45  ;;  %v3070_v36 = vor.u32 %v3705_v23, %v3067_v26  ;;  %v3719_v43 = vld [vmem:[#allocation7 + $0x84] sm:$0xf]  ;;  %v3243_v48 = vld [vmem:[#allocation8 + $0x78] sm:$0xf0]  ;;  %v3226_v9 = vor.u32 %v3746_v2, %v3225_v1  ;;  %v3281_v17 = vld [vmem:[#allocation8 + $0xc0] sm:$0xf] }
  0xbf   : > { %1577 = vmatpush.bf16.msra.mxu1 %v3178_v20  ;;  %1603 = vmatpush.bf16.msra.mxu3 %v3182_v27  ;;  %v3129_v20 = vld [vmem:[#allocation7 + $0x90] sm:$0xf]  ;;  %v3721_v27 = vld [vmem:[#allocation7 + $0x94] sm:$0xf]  ;;  %v3246_v57 = vor.u32 %v3749_v47, %v3243_v48  ;;  %v3743_v23 = vld [vmem:[#allocation8 + $0x44] sm:$0xf] }
  0xc0   : > { %v3130_v29 = vor.u32 %v3722_v21, %v3129_v20  ;;  %v3265_v47 = vld [vmem:[#allocation8 + $0xa0] sm:$0xf] }
  0xc1   : > { %1565 = vmatpush.bf16.msra.mxu0 %v3106_v28  ;;  %1591 = vmatpush.bf16.msra.mxu2 %v3110_v38  ;;  %v3131_v28 = vld [vmem:[#allocation7 + $0x98] sm:$0xf0]  ;;  %v3305_v38 = vld [vmem:[#allocation8 + $0xf0] sm:$0xf] }
  0xc3   : > { %1578 = vmatpush.bf16.msra.mxu1 %v3170_v32  ;;  %1604 = vmatpush.bf16.msra.mxu3 %v3174_v39  ;;  %v3121_v32 = vld [vmem:[#allocation7 + $0x80] sm:$0xf]  ;;  %v3766_v39 = vld [vmem:[#allocation8 + $0xf4] sm:$0xf0] }
  0xc4   : > { %v3122_v45 = vor.u32 %v3720_v33, %v3121_v32  ;;  %v3758_v32 = vld [vmem:[#allocation8 + $0xb4] sm:$0xf0]  ;;  %v484_v33 = vperm.slane %v4314_v6, 1 }
  0xc5   : > { %1566 = vmatpush.bf16.msra.mxu0 %v3098_v40  ;;  %1592 = vmatpush.bf16.msra.mxu2 %v3102_v49  ;;  %v3134_v40 = vor.u32 %v3721_v27, %v3131_v28  ;;  %v3306_v49 = vor.u32 %v3766_v39, %v3305_v38  ;;  %v3282_v27 = vor.u32 %v3760_v18, %v3281_v17  ;;  %v3283_v28 = vld [vmem:[#allocation8 + $0xc8] sm:$0xf0]  ;;  %v3249_v18 = vld [vmem:[#allocation8 + $0x80] sm:$0xf] }
  0xc7   : > { %1579 = vmatpush.bf16.msra.mxu1 %v3162_v44  ;;  %1605 = vmatpush.bf16.msra.mxu3 %v3166_v3  ;;  %v3123_v44 = vld [vmem:[#allocation7 + $0x88] sm:$0xf0]  ;;  %v3307_v3 = vld [vmem:[#allocation8 + $0xf8] sm:$0xf0] }
  0xc8   : > { %v3126_v56 = vor.u32 %v3719_v43, %v3123_v44  ;;  %v3310_v58 = vor.u32 %v3765_v55, %v3307_v3  ;;  %v3274_v43 = vor.u32 %v3758_v32, %v3273_v31  ;;  %v3434_v32 = vld [vmem:[#allocation7 + $0x1f0] sm:$0xf] }
  0xc9   : > { %1567 = vmatpush.bf16.msra.mxu0 %v3090_v50  ;;  %1593 = vmatpush.bf16.msra.mxu2 %v3094_v61  ;;  %v3233_v50 = vld [vmem:[#allocation8 + $0x60] sm:$0xf]  ;;  %v3235_v61 = vld [vmem:[#allocation8 + $0x68] sm:$0xf0] }
  0xca   : > { %v3234_v59 = vor.u32 %v3748_v51, %v3233_v50  ;;  %v3238_v7 = vor.u32 %v3747_v60, %v3235_v61  ;;  %v3738_v60 = vld [vmem:[#allocation8 + $0x14] sm:$0xf0]  ;;  %v3257_v61 = vld [vmem:[#allocation8 + $0x90] sm:$0xf] }
  0xcb   : > { %1580 = vmatpush.bf16.msra.mxu1 %v3154_v54  ;;  %1606 = vmatpush.bf16.msra.mxu3 %v3158_v62  ;;  %v3764_v54 = vld [vmem:[#allocation8 + $0xe4] sm:$0xf0]  ;;  %v3763_v62 = vld [vmem:[#allocation8 + $0xe4] sm:$0xf] }
  0xcc   : > { %v3302_v8 = vor.u32 %v3763_v62, %v3299_v0  ;;  %v3754_v0 = vld [vmem:[#allocation8 + $0x94] sm:$0xf0] }
  0xcd   : > { %1568 = vmatpush.bf16.msra.mxu0 %v3082_v63  ;;  %1594 = vmatpush.bf16.msra.mxu2 %v3086_v10  ;;  %v3298_v63 = vor.u32 %v3764_v54, %v3297_v53  ;;  %v3745_v10 = vld [vmem:[#allocation8 + $0x54] sm:$0xf]  ;;  %v3203_v53 = vld [vmem:[#allocation8 + $0x28] sm:$0xf0] }
  0xcf   : > { %1581 = vmatpush.bf16.msra.mxu1 %v3146_v4  ;;  %1607 = vmatpush.bf16.msra.mxu3 %v3150_v11  ;;  %v3289_v4 = vld [vmem:[#allocation8 + $0xd0] sm:$0xf]  ;;  %v3227_v11 = vld [vmem:[#allocation8 + $0x58] sm:$0xf0] }
  0xd0   : > { %v3290_v13 = vor.u32 %v3762_v5, %v3289_v4  ;;  %v3230_v20 = vor.u32 %v3745_v10, %v3227_v11  ;;  %v3258_v10 = vor.u32 %v3754_v0, %v3257_v61  ;;  %v3753_v11 = vld [vmem:[#allocation8 + $0x94] sm:$0xf]  ;;  %v3794_v61 = vld [vmem:[#allocation7 + $0x1d4] sm:$0xf0] }
  0xd1   : > { %1569 = vmatpush.bf16.msra.mxu0 %v3074_v12  ;;  %1595 = vmatpush.bf16.msra.mxu2 %v3078_v22  ;;  %v3761_v12 = vld [vmem:[#allocation8 + $0xd4] sm:$0xf] }
  0xd2   : > { %v3294_v21 = vor.u32 %v3761_v12, %v3291_v14  ;;  %v3259_v12 = vld [vmem:[#allocation8 + $0x98] sm:$0xf0]  ;;  %v3793_v0 = vld [vmem:[#allocation7 + $0x1d4] sm:$0xf] }
  0xd3   : > { %1582 = vmatpush.bf16.msra.mxu1 %v3138_v16  ;;  %1608 = vmatpush.bf16.msra.mxu3 %v3142_v24  ;;  %v3744_v16 = vld [vmem:[#allocation8 + $0x44] sm:$0xf0]  ;;  %v3219_v24 = vld [vmem:[#allocation8 + $0x48] sm:$0xf0] }
  0xd4   : > { %v3218_v22 = vor.u32 %v3744_v16, %v3217_v15  ;;  %v3222_v34 = vor.u32 %v3743_v23, %v3219_v24  ;;  %v3185_v15 = vld [vmem:[#allocation8] sm:$0xf]  ;;  %v3736_v16 = vld [vmem:[#allocation8 + $0x4] sm:$0xf0]  ;;  %v3735_v23 = vld [vmem:[#allocation8 + $0x4] sm:$0xf] }
  0xd5   : > { %1570 = vmatpush.bf16.msra.mxu0 %v3066_v25  ;;  %1596 = vmatpush.bf16.msra.mxu2 %v3070_v36  ;;  %v3759_v25 = vld [vmem:[#allocation8 + $0xc4] sm:$0xf]  ;;  %v3187_v24 = vld [vmem:[#allocation8 + $0x8] sm:$0xf0] }
  0xd6   : > { %v3286_v38 = vor.u32 %v3759_v25, %v3283_v28  ;;  %v3751_v25 = vld [vmem:[#allocation8 + $0x84] sm:$0xf]  ;;  %v3370_v28 = vld [vmem:[#allocation7 + $0x170] sm:$0xf] }
  0xd7   : > { %1583 = vmatpush.bf16.msra.mxu1 %v3130_v29  ;;  %1609 = vmatpush.bf16.msra.mxu3 %v3134_v40  ;;  %v3209_v29 = vld [vmem:[#allocation8 + $0x30] sm:$0xf]  ;;  %v3211_v40 = vld [vmem:[#allocation8 + $0x38] sm:$0xf0] }
  0xd8   : > { %v3210_v39 = vor.u32 %v3742_v30, %v3209_v29  ;;  %v3214_v48 = vor.u32 %v3741_v35, %v3211_v40  ;;  %v3782_v29 = vld [vmem:[#allocation7 + $0x174] sm:$0xf0] }
  0xd9   : > { %1571 = vmatpush.bf16.msra.mxu0 %v3058_v41  ;;  %1597 = vmatpush.bf16.msra.mxu2 %v3062_v52  ;;  %v1148_v26 = vpop.f32.mrf.mxu0  ;;  %v3757_v41 = vld [vmem:[#allocation8 + $0xb4] sm:$0xf]  ;;  %v3739_v52 = vld [vmem:[#allocation8 + $0x24] sm:$0xf] }
  0xda   : > { %v1149_v36 = vadd.f32 %v1148_v26, %v483_v19  ;;  %v3278_v55 = vor.u32 %v3757_v41, %v3275_v42  ;;  %v3752_v19 = vld [vmem:[#allocation8 + $0x84] sm:$0xf0] }
  0xdb   : > { %1584 = vmatpush.bf16.msra.mxu1 %v3122_v45  ;;  %1610 = vmatpush.bf16.msra.mxu3 %v3126_v56  ;;  %v1161_v37 = vpop.f32.mrf.mxu1  ;;  %v3201_v45 = vld [vmem:[#allocation8 + $0x20] sm:$0xf]  ;;  %v3250_v26 = vor.u32 %v3752_v19, %v3249_v18 }
  0xdc   : > { %v1162_v50 = vadd.f32 %v1161_v37, %v1149_v36  ;;  %v3190_v36 = vor.u32 %v3735_v23, %v3187_v24  ;;  %v3372_v37 = vld [vmem:[#allocation7 + $0x178] sm:$0xf0]  ;;  %v3338_v23 = vld [vmem:[#allocation7 + $0x130] sm:$0xf]  ;;  %v3774_v24 = vld [vmem:[#allocation7 + $0x134] sm:$0xf0] }
  0xdd   : > { %1821 = vmatpush.bf16.msrb.mxu0 %v3242_v46  ;;  %1847 = vmatpush.bf16.msrb.mxu2 %v3246_v57  ;;  %v3740_v46 = vld [vmem:[#allocation8 + $0x24] sm:$0xf0]  ;;  %v3755_v57 = vld [vmem:[#allocation8 + $0xa4] sm:$0xf] }
  0xde   : > { %v3202_v51 = vor.u32 %v3740_v46, %v3201_v45  ;;  %v1347_v1 = vmax.f32 %v1162_v50, 0.0  ;;  %v3362_v45 = vld [vmem:[#allocation7 + $0x160] sm:$0xf]  ;;  %v3780_v46 = vld [vmem:[#allocation7 + $0x164] sm:$0xf0] }
  0xdf   : > { %1834 = vmatpush.bf16.msrb.mxu1 %v3306_v49  ;;  %1860 = vmatpush.bf16.msrb.mxu3 %v3310_v58  ;;  %v1174_v44 = vpop.f32.mrf.mxu2  ;;  %v3756_v49 = vld [vmem:[#allocation8 + $0xa4] sm:$0xf0]  ;;  %v3267_v58 = vld [vmem:[#allocation8 + $0xa8] sm:$0xf0] }
  0xe0   : > { %v1175_v3 = vadd.f32 %v1174_v44, %v484_v33  ;;  %v3266_v56 = vor.u32 %v3756_v49, %v3265_v47  ;;  %v3270_v5 = vor.u32 %v3755_v57, %v3267_v58  ;;  %v3798_v33 = vld [vmem:[#allocation7 + $0x1f4] sm:$0xf0]  ;;  %v3796_v49 = vld [vmem:[#allocation7 + $0x1e4] sm:$0xf0]  ;;  %v3364_v50 = vld [vmem:[#allocation7 + $0x168] sm:$0xf0] }
  0xe1   : > { %1822 = vmatpush.bf16.msrb.mxu0 %v3234_v59  ;;  %1848 = vmatpush.bf16.msrb.mxu2 %v3238_v7  ;;  %v1150_v54 = vpop.f32.mrf.mxu0  ;;  %v3193_v59 = vld [vmem:[#allocation8 + $0x10] sm:$0xf]  ;;  %v1187_v62 = vpop.f32.mrf.mxu3  ;;  %v3435_v44 = vor.u32 %v3798_v33, %v3434_v32  ;;  %v3778_v57 = vld [vmem:[#allocation7 + $0x154] sm:$0xf0]  ;;  %v3789_v32 = vld [vmem:[#allocation7 + $0x1b4] sm:$0xf] }
  0xe2   : > { %v1188_v2 = vadd.f32 %v1187_v62, %v1175_v3  ;;  %v3194_v7 = vor.u32 %v3738_v60, %v3193_v59  ;;  %v3779_v3 = vld [vmem:[#allocation7 + $0x164] sm:$0xf]  ;;  %v3418_v60 = vld [vmem:[#allocation7 + $0x1d0] sm:$0xf]  ;;  %v3777_v62 = vld [vmem:[#allocation7 + $0x154] sm:$0xf] }
  0xe3   : > { %1835 = vmatpush.bf16.msrb.mxu1 %v3298_v63  ;;  %1861 = vmatpush.bf16.msrb.mxu3 %v3302_v8  ;;  %v3206_v63 = vor.u32 %v3739_v52, %v3203_v53  ;;  %v1163_v4 = vpop.f32.mrf.mxu1  ;;  %v3737_v8 = vld [vmem:[#allocation8 + $0x14] sm:$0xf]  ;;  %v3428_v52 = vld [vmem:[#allocation7 + $0x1e8] sm:$0xf0]  ;;  %v3363_v53 = vor.u32 %v3780_v46, %v3362_v45  ;;  %v3367_v58 = vor.u32 %v3779_v3, %v3364_v50  ;;  %v3404_v33 = vld [vmem:[#allocation7 + $0x1b8] sm:$0xf0] }
  0xe4   : > { %v3771_v45 = vld [vmem:[#allocation7 + $0x124] sm:$0xf]  ;;  %v3332_v46 = vld [vmem:[#allocation7 + $0x128] sm:$0xf0] }
  0xe5   : > { %1823 = vmatpush.bf16.msrb.mxu0 %v3226_v9  ;;  %1849 = vmatpush.bf16.msrb.mxu2 %v3230_v20  ;;  %v3195_v9 = vld [vmem:[#allocation8 + $0x18] sm:$0xf0]  ;;  %v3396_v3 = vld [vmem:[#allocation7 + $0x1a8] sm:$0xf0] }
  0xe6   : > { %v3198_v17 = vor.u32 %v3737_v8, %v3195_v9  ;;  %v3776_v8 = vld [vmem:[#allocation7 + $0x144] sm:$0xf0] }
  0xe7   : > { %1836 = vmatpush.bf16.msrb.mxu1 %v3290_v13  ;;  %1862 = vmatpush.bf16.msrb.mxu3 %v3294_v21  ;;  %v1348_v13 = vmax.f32 %v1188_v2, 0.0  ;;  %v1176_v14 = vpop.f32.mrf.mxu2  ;;  %v3262_v21 = vor.u32 %v3753_v11, %v3259_v12  ;;  %v485_v2 = vperm.slane %v4314_v6, 2  ;;  %v3410_v11 = vld [vmem:[#allocation7 + $0x1c0] sm:$0xf]  ;;  %v3792_v12 = vld [vmem:[#allocation7 + $0x1c4] sm:$0xf0] }
  0xe9   : > { %1824 = vmatpush.bf16.msrb.mxu0 %v3218_v22  ;;  %1850 = vmatpush.bf16.msrb.mxu2 %v3222_v34  ;;  %v1355_v20 = vpack.c.bf16 %v1348_v13, %v1347_v1  ;;  %v3186_v22 = vor.u32 %v3736_v16, %v3185_v15  ;;  %v3781_v34 = vld [vmem:[#allocation7 + $0x174] sm:$0xf]  ;;  %v1189_v35 = vpop.f32.mrf.mxu3  ;;  %v3420_v1 = vld [vmem:[#allocation7 + $0x1d8] sm:$0xf0]  ;;  %v3775_v13 = vld [vmem:[#allocation7 + $0x144] sm:$0xf] }
  0xea   : > { %v3375_v47 = vor.u32 %v3781_v34, %v3372_v37  ;;  %v3348_v15 = vld [vmem:[#allocation7 + $0x148] sm:$0xf0]  ;;  %v3791_v16 = vld [vmem:[#allocation7 + $0x1c4] sm:$0xf]  ;;  %v3339_v37 = vor.u32 %v3774_v24, %v3338_v23  ;;  %v3814_v23 = vld [vmem:[#allocation8 + $0x174] sm:$0xf0] }
  0xeb   : > { %1837 = vmatpush.bf16.msrb.mxu1 %v3282_v27  ;;  %1863 = vmatpush.bf16.msrb.mxu3 %v3286_v38  ;;  %v3251_v27 = vld [vmem:[#allocation8 + $0x88] sm:$0xf0]  ;;  %v1398_v30 = vunpack.c.l.b16 %v1355_v20  ;;  %v1399_v31 = vunpack.c.h.b16 %v1355_v20  ;;  %v3797_v38 = vld [vmem:[#allocation7 + $0x1f4] sm:$0xf]  ;;  %v486_v20 = vperm.slane %v4314_v6, 3 }
  0xec   : > { %v3254_v42 = vor.u32 %v3751_v25, %v3251_v27  ;;  %v3351_v25 = vor.u32 %v3775_v13, %v3348_v15  ;;  %v3402_v27 = vld [vmem:[#allocation7 + $0x1b0] sm:$0xf]  ;;  %v3768_v13 = vld [vmem:[#allocation7 + $0x104] sm:$0xf0] }
  0xed   : > { %1825 = vmatpush.bf16.msrb.mxu0 %v3210_v39  ;;  %1851 = vmatpush.bf16.msrb.mxu2 %v3214_v48  ;;  %v3436_v39 = vld [vmem:[#allocation7 + $0x1f8] sm:$0xf0]  ;;  %v1400_v40 = vpack.c.b16 %v1398_v30, %v1398_v30  ;;  %v1401_v41 = vpack.c.b16 %v1399_v31, %v1399_v31  ;;  %v3784_v15 = vld [vmem:[#allocation7 + $0x184] sm:$0xf0]  ;;  %v3563_v24 = vld [vmem:[#allocation8 + $0x1f0] sm:$0xf] }
  0xee   : > { %v3439_v48 = vor.u32 %v3797_v38, %v3436_v39  ;;  %v3340_v31 = vld [vmem:[#allocation7 + $0x138] sm:$0xf0]  ;;  %v3330_v39 = vld [vmem:[#allocation7 + $0x120] sm:$0xf] }
  0xef   : > { %1838 = vmatpush.bf16.msrb.mxu1 %v3274_v43  ;;  %1864 = vmatpush.bf16.msrb.mxu3 %v3278_v55  ;;  %v3371_v43 = vor.u32 %v3782_v29, %v3370_v28  ;;  %v3426_v55 = vld [vmem:[#allocation7 + $0x1e0] sm:$0xf]  ;;  %v3790_v28 = vld [vmem:[#allocation7 + $0x1b4] sm:$0xf0]  ;;  %v3773_v29 = vld [vmem:[#allocation7 + $0x134] sm:$0xf] }
  0xf0   : > { %1572 = vmatmul.bf16.vlgmr.msra.gmra.mxu0 %v1400_v40  ;;  %1598 = vmatmul.bf16.vlgmr.msra.gmra.mxu2 %v1400_v40  ;;  %v3427_v54 = vor.u32 %v3796_v49, %v3426_v55  ;;  %v3403_v38 = vor.u32 %v3790_v28, %v3402_v27  ;;  %v3772_v40 = vld [vmem:[#allocation7 + $0x124] sm:$0xf0]  ;;  %v3787_v49 = vld [vmem:[#allocation7 + $0x1a4] sm:$0xf] }
  0xf1   : > { %1826 = vmatpush.bf16.msrb.mxu0 %v3202_v51  ;;  %1852 = vmatpush.bf16.msrb.mxu2 %v3206_v63  ;;  %v3795_v51 = vld [vmem:[#allocation7 + $0x1e4] sm:$0xf]  ;;  %v3356_v63 = vld [vmem:[#allocation7 + $0x158] sm:$0xf0] }
  0xf2   : > { %1585 = vmatmul.bf16.vlgmr.msra.gmra.mxu1 %v1401_v41  ;;  %1611 = vmatmul.bf16.vlgmr.msra.gmra.mxu3 %v1401_v41  ;;  %v3431_v59 = vor.u32 %v3795_v51, %v3428_v52  ;;  %v3359_v9 = vor.u32 %v3777_v62, %v3356_v63  ;;  %v3394_v41 = vld [vmem:[#allocation7 + $0x1a0] sm:$0xf]  ;;  %v3331_v52 = vor.u32 %v3772_v40, %v3330_v39  ;;  %v3786_v62 = vld [vmem:[#allocation7 + $0x194] sm:$0xf0]  ;;  %v3769_v63 = vld [vmem:[#allocation7 + $0x114] sm:$0xf] }
  0xf3   : > { %1839 = vmatpush.bf16.msrb.mxu1 %v3266_v56  ;;  %1865 = vmatpush.bf16.msrb.mxu3 %v3270_v5  ;;  %v3354_v56 = vld [vmem:[#allocation7 + $0x150] sm:$0xf]  ;;  %v3419_v5 = vor.u32 %v3794_v61, %v3418_v60  ;;  %v3555_v40 = vld [vmem:[#allocation8 + $0x1e0] sm:$0xf] }
  0xf4   : > { %v3355_v4 = vor.u32 %v3778_v57, %v3354_v56  ;;  %v3399_v56 = vor.u32 %v3787_v49, %v3396_v3  ;;  %v3386_v61 = vld [vmem:[#allocation7 + $0x190] sm:$0xf]  ;;  %v3810_v49 = vld [vmem:[#allocation8 + $0x154] sm:$0xf0] }
  0xf5   : > { %1827 = vmatpush.bf16.msrb.mxu0 %v3194_v7  ;;  %1853 = vmatpush.bf16.msrb.mxu2 %v3198_v17  ;;  %v3346_v7 = vld [vmem:[#allocation7 + $0x140] sm:$0xf]  ;;  %v3412_v17 = vld [vmem:[#allocation7 + $0x1c8] sm:$0xf0] }
  0xf7   : > { %1840 = vmatpush.bf16.msrb.mxu1 %v3258_v10  ;;  %1866 = vmatpush.bf16.msrb.mxu3 %v3262_v21  ;;  %v3423_v10 = vor.u32 %v3793_v0, %v3420_v1  ;;  %v3347_v21 = vor.u32 %v3776_v8, %v3346_v7  ;;  %v3388_v7 = vld [vmem:[#allocation7 + $0x198] sm:$0xf0]  ;;  %v3314_v8 = vld [vmem:[#allocation7 + $0x100] sm:$0xf] }
  0xf8   : > { %v3315_v27 = vor.u32 %v3768_v13, %v3314_v8  ;;  %v3807_v8 = vld [vmem:[#allocation8 + $0x144] sm:$0xf] }
  0xf9   : > { %1828 = vmatpush.bf16.msrb.mxu0 %v3186_v22  ;;  %1854 = vmatpush.bf16.msrb.mxu2 %v3190_v36  ;;  %v1200_v14 = vpop.f32.mrf.mxu0  ;;  %v3411_v22 = vor.u32 %v3792_v12, %v3410_v11  ;;  %v3387_v12 = vor.u32 %v3786_v62, %v3386_v61  ;;  %v3475_v62 = vld [vmem:[#allocation8 + $0x140] sm:$0xf] }
  0xfa   : > { %v1201_v18 = vadd.f32 %v1200_v14, %v485_v2  ;;  %v3378_v14 = vld [vmem:[#allocation7 + $0x180] sm:$0xf] }
  0xfb   : > { %1841 = vmatpush.bf16.msrb.mxu1 %v3250_v26  ;;  %1867 = vmatpush.bf16.msrb.mxu3 %v3254_v42  ;;  %v1213_v19 = vpop.f32.mrf.mxu1  ;;  %v3415_v26 = vor.u32 %v3791_v16, %v3412_v17  ;;  %v3343_v42 = vor.u32 %v3773_v29, %v3340_v31  ;;  %v3379_v28 = vor.u32 %v3784_v15, %v3378_v14  ;;  %v3501_v29 = vld [vmem:[#allocation8 + $0x178] sm:$0xf0]  ;;  %v3467_v15 = vld [vmem:[#allocation8 + $0x130] sm:$0xf] }
  0xfc   : > { %v1214_v30 = vadd.f32 %v1213_v19, %v1201_v18  ;;  %v3767_v18 = vld [vmem:[#allocation7 + $0x104] sm:$0xf]  ;;  %v3316_v19 = vld [vmem:[#allocation7 + $0x108] sm:$0xf0]  ;;  %v3565_v31 = vld [vmem:[#allocation8 + $0x1f8] sm:$0xf0] }
  0xfd   : > { %2088 = vmatpush.bf16.msra.mxu0 %v3371_v43  ;;  %2114 = vmatpush.bf16.msra.mxu2 %v3375_v47  ;;  %v3407_v43 = vor.u32 %v3789_v32, %v3404_v33  ;;  %v3319_v32 = vor.u32 %v3767_v18, %v3316_v19 }
  0xfe   : > { %v1349_v47 = vmax.f32 %v1214_v30, 0.0  ;;  %v3829_v30 = vld [vmem:[#allocation8 + $0x1f4] sm:$0xf] }
  0xff   : > { %2101 = vmatpush.bf16.msra.mxu1 %v3435_v44  ;;  %2127 = vmatpush.bf16.msra.mxu3 %v3439_v48  ;;  %v1226_v34 = vpop.f32.mrf.mxu2  ;;  %v3788_v44 = vld [vmem:[#allocation7 + $0x1a4] sm:$0xf0]  ;;  %v3568_v39 = vor.u32 %v3829_v30, %v3565_v31 }
 0x100   : > { %v1227_v35 = vadd.f32 %v1226_v34, %v486_v20  ;;  %v3783_v20 = vld [vmem:[#allocation7 + $0x184] sm:$0xf] }
 0x101   : > { %2089 = vmatpush.bf16.msra.mxu0 %v3363_v53  ;;  %2115 = vmatpush.bf16.msra.mxu2 %v3367_v58  ;;  %v1239_v36 = vpop.f32.mrf.mxu3  ;;  %v1202_v55 = vpop.f32.mrf.mxu0  ;;  %v3395_v53 = vor.u32 %v3788_v44, %v3394_v41  ;;  %v3322_v58 = vld [vmem:[#allocation7 + $0x110] sm:$0xf]  ;;  %v3828_v41 = vld [vmem:[#allocation8 + $0x1e4] sm:$0xf0]  ;;  %v3827_v44 = vld [vmem:[#allocation8 + $0x1e4] sm:$0xf] }
 0x102   : > { %v1240_v48 = vadd.f32 %v1239_v36, %v1227_v35  ;;  %v3491_v36 = vld [vmem:[#allocation8 + $0x160] sm:$0xf]  ;;  %v3483_v55 = vld [vmem:[#allocation8 + $0x150] sm:$0xf] }
 0x103   : > { %2102 = vmatpush.bf16.msra.mxu1 %v3427_v54  ;;  %2128 = vmatpush.bf16.msra.mxu3 %v3431_v59  ;;  %v1215_v50 = vpop.f32.mrf.mxu1  ;;  %v3335_v54 = vor.u32 %v3771_v45, %v3332_v46  ;;  %v3770_v59 = vld [vmem:[#allocation7 + $0x114] sm:$0xf0]  ;;  %v3557_v45 = vld [vmem:[#allocation8 + $0x1e8] sm:$0xf0]  ;;  %v487_v46 = vperm.slane %v4314_v6, 4 }
 0x104   : > { %v1350_v51 = vmax.f32 %v1240_v48, 0.0  ;;  %v3323_v11 = vor.u32 %v3770_v59, %v3322_v58  ;;  %v3556_v48 = vor.u32 %v3828_v41, %v3555_v40  ;;  %v3560_v50 = vor.u32 %v3827_v44, %v3557_v45  ;;  %v3803_v40 = vld [vmem:[#allocation8 + $0x124] sm:$0xf]  ;;  %v3461_v41 = vld [vmem:[#allocation8 + $0x128] sm:$0xf0] }
 0x105   : > { %2090 = vmatpush.bf16.msra.mxu0 %v3355_v4  ;;  %2116 = vmatpush.bf16.msra.mxu2 %v3359_v9  ;;  %v3324_v4 = vld [vmem:[#allocation7 + $0x118] sm:$0xf0]  ;;  %v488_v59 = vperm.slane %v4314_v6, 5  ;;  %v3525_v44 = vld [vmem:[#allocation8 + $0x1a8] sm:$0xf0] }
 0x106   : > { %v1356_v57 = vpack.c.bf16 %v1350_v51, %v1349_v47  ;;  %v3327_v16 = vor.u32 %v3769_v63, %v3324_v4  ;;  %v3547_v51 = vld [vmem:[#allocation8 + $0x1d0] sm:$0xf]  ;;  %v3808_v63 = vld [vmem:[#allocation8 + $0x144] sm:$0xf0] }
 0x107   : > { %2103 = vmatpush.bf16.msra.mxu1 %v3419_v5  ;;  %2129 = vmatpush.bf16.msra.mxu3 %v3423_v10  ;;  %v1228_v60 = vpop.f32.mrf.mxu2  ;;  %v3785_v5 = vld [vmem:[#allocation7 + $0x194] sm:$0xf]  ;;  %v3476_v13 = vor.u32 %v3808_v63, %v3475_v62 }
 0x108   : > { %v1655_v0 = vunpack.c.l.b16 %v1356_v57  ;;  %v1656_v1 = vunpack.c.h.b16 %v1356_v57  ;;  %v3391_v17 = vor.u32 %v3785_v5, %v3388_v7  ;;  %v3549_v57 = vld [vmem:[#allocation8 + $0x1d8] sm:$0xf0]  ;;  %v3484_v60 = vor.u32 %v3810_v49, %v3483_v55  ;;  %v3539_v5 = vld [vmem:[#allocation8 + $0x1c0] sm:$0xf]  ;;  %v3824_v7 = vld [vmem:[#allocation8 + $0x1c4] sm:$0xf0] }
 0x109   : > { %2091 = vmatpush.bf16.msra.mxu0 %v3347_v21  ;;  %2117 = vmatpush.bf16.msra.mxu2 %v3351_v25  ;;  %v1241_v2 = vpop.f32.mrf.mxu3  ;;  %v3380_v21 = vld [vmem:[#allocation7 + $0x188] sm:$0xf0]  ;;  %v3830_v25 = vld [vmem:[#allocation8 + $0x1f4] sm:$0xf0]  ;;  %v3540_v14 = vor.u32 %v3824_v7, %v3539_v5  ;;  %v3507_v7 = vld [vmem:[#allocation8 + $0x180] sm:$0xf] }
 0x10a   : > { %v1657_v9 = vpack.c.b16 %v1655_v0, %v1655_v0  ;;  %v1658_v10 = vpack.c.b16 %v1656_v1, %v1656_v1  ;;  %v3383_v33 = vor.u32 %v3783_v20, %v3380_v21  ;;  %v3564_v35 = vor.u32 %v3830_v25, %v3563_v24  ;;  %v3531_v20 = vld [vmem:[#allocation8 + $0x1b0] sm:$0xf]  ;;  %v3822_v21 = vld [vmem:[#allocation8 + $0x1b4] sm:$0xf0]  ;;  %v3469_v25 = vld [vmem:[#allocation8 + $0x138] sm:$0xf0] }
 0x10b   : > { %2104 = vmatpush.bf16.msra.mxu1 %v3411_v22  ;;  %2130 = vmatpush.bf16.msra.mxu3 %v3415_v26  ;;  %v3499_v22 = vld [vmem:[#allocation8 + $0x170] sm:$0xf]  ;;  %v3813_v26 = vld [vmem:[#allocation8 + $0x174] sm:$0xf]  ;;  %v3802_v55 = vld [vmem:[#allocation8 + $0x114] sm:$0xf0] }
 0x10c   : > { %1829 = vmatmul.bf16.vlgmr.msrb.gmra.mxu0 %v1657_v9  ;;  %1855 = vmatmul.bf16.vlgmr.msrb.gmra.mxu2 %v1657_v9  ;;  %v3500_v34 = vor.u32 %v3814_v23, %v3499_v22  ;;  %v3477_v9 = vld [vmem:[#allocation8 + $0x148] sm:$0xf0]  ;;  %v3805_v22 = vld [vmem:[#allocation8 + $0x134] sm:$0xf] }
 0x10d   : > { %2092 = vmatpush.bf16.msra.mxu0 %v3339_v37  ;;  %2118 = vmatpush.bf16.msra.mxu2 %v3343_v42  ;;  %v3812_v37 = vld [vmem:[#allocation8 + $0x164] sm:$0xf0]  ;;  %v3811_v42 = vld [vmem:[#allocation8 + $0x164] sm:$0xf]  ;;  %v3480_v18 = vor.u32 %v3807_v8, %v3477_v9 }
 0x10e   : > { %1842 = vmatmul.bf16.vlgmr.msrb.gmra.mxu1 %v1658_v10  ;;  %1868 = vmatmul.bf16.vlgmr.msrb.gmra.mxu3 %v1658_v10  ;;  %v3492_v47 = vor.u32 %v3812_v37, %v3491_v36  ;;  %v3823_v10 = vld [vmem:[#allocation8 + $0x1c4] sm:$0xf]  ;;  %v3472_v37 = vor.u32 %v3805_v22, %v3469_v25  ;;  %v3816_v8 = vld [vmem:[#allocation8 + $0x184] sm:$0xf0] }
 0x10f   : > { %2105 = vmatpush.bf16.msra.mxu1 %v3403_v38  ;;  %2131 = vmatpush.bf16.msra.mxu3 %v3407_v43  ;;  %v3504_v38 = vor.u32 %v3813_v26, %v3501_v29  ;;  %v3493_v43 = vld [vmem:[#allocation8 + $0x168] sm:$0xf0]  ;;  %v3821_v26 = vld [vmem:[#allocation8 + $0x1b4] sm:$0xf]  ;;  %v3799_v9 = vld [vmem:[#allocation8 + $0x104] sm:$0xf] }
 0x110   : > { %v3496_v3 = vor.u32 %v3811_v42, %v3493_v43  ;;  %v3819_v43 = vld [vmem:[#allocation8 + $0x1a4] sm:$0xf] }
 0x111   : > { %2093 = vmatpush.bf16.msra.mxu0 %v3331_v52  ;;  %2119 = vmatpush.bf16.msra.mxu2 %v3335_v54  ;;  %v3826_v52 = vld [vmem:[#allocation8 + $0x1d4] sm:$0xf0]  ;;  %v3485_v54 = vld [vmem:[#allocation8 + $0x158] sm:$0xf0] }
 0x112   : > { %v3548_v61 = vor.u32 %v3826_v52, %v3547_v51  ;;  %v3515_v51 = vld [vmem:[#allocation8 + $0x190] sm:$0xf]  ;;  %v3818_v52 = vld [vmem:[#allocation8 + $0x194] sm:$0xf0] }
 0x113   : > { %2106 = vmatpush.bf16.msra.mxu1 %v3395_v53  ;;  %2132 = vmatpush.bf16.msra.mxu3 %v3399_v56  ;;  %v3809_v53 = vld [vmem:[#allocation8 + $0x154] sm:$0xf] }
 0x114   : > { %v3825_v56 = vld [vmem:[#allocation8 + $0x1d4] sm:$0xf]  ;;  %v3488_v2 = vor.u32 %v3809_v53, %v3485_v54 }
 0x115   : > { %2094 = vmatpush.bf16.msra.mxu0 %v3323_v11  ;;  %2120 = vmatpush.bf16.msra.mxu2 %v3327_v16  ;;  %v3552_v4 = vor.u32 %v3825_v56, %v3549_v57  ;;  %v3541_v11 = vld [vmem:[#allocation8 + $0x1c8] sm:$0xf0]  ;;  %v3806_v16 = vld [vmem:[#allocation8 + $0x134] sm:$0xf0]  ;;  %v3801_v53 = vld [vmem:[#allocation8 + $0x114] sm:$0xf] }
 0x116   : > { %v3544_v19 = vor.u32 %v3823_v10, %v3541_v11  ;;  %v3445_v10 = vld [vmem:[#allocation8 + $0x108] sm:$0xf0]  ;;  %v3815_v11 = vld [vmem:[#allocation8 + $0x184] sm:$0xf] }
 0x117   : > { %2107 = vmatpush.bf16.msra.mxu1 %v3387_v12  ;;  %2133 = vmatpush.bf16.msra.mxu3 %v3391_v17 }
 0x119   : > { %2095 = vmatpush.bf16.msra.mxu0 %v3315_v27  ;;  %2121 = vmatpush.bf16.msra.mxu2 %v3319_v32  ;;  %v1252_v58 = vpop.f32.mrf.mxu0  ;;  %v3533_v27 = vld [vmem:[#allocation8 + $0x1b8] sm:$0xf0]  ;;  %v3468_v32 = vor.u32 %v3806_v16, %v3467_v15  ;;  %v3448_v15 = vor.u32 %v3799_v9, %v3445_v10 }
 0x11a   : > { %v1253_v0 = vadd.f32 %v1252_v58, %v487_v46  ;;  %v3453_v58 = vld [vmem:[#allocation8 + $0x118] sm:$0xf0] }
 0x11b   : > { %2108 = vmatpush.bf16.msra.mxu1 %v3379_v28  ;;  %2134 = vmatpush.bf16.msra.mxu3 %v3383_v33  ;;  %v1265_v1 = vpop.f32.mrf.mxu1  ;;  %v3459_v28 = vld [vmem:[#allocation8 + $0x120] sm:$0xf]  ;;  %v3532_v33 = vor.u32 %v3822_v21, %v3531_v20  ;;  %v490_v21 = vperm.slane %v4314_v6, 7 }
 0x11c   : > { %v1266_v12 = vadd.f32 %v1265_v1, %v1253_v0  ;;  %v3516_v0 = vor.u32 %v3818_v52, %v3515_v51  ;;  %v3443_v1 = vld [vmem:[#allocation8 + $0x100] sm:$0xf] }
 0x11d   : > { %2347 = vmatpush.bf16.msrb.mxu0 %v3500_v34  ;;  %2373 = vmatpush.bf16.msrb.mxu2 %v3504_v38  ;;  %v3804_v34 = vld [vmem:[#allocation8 + $0x124] sm:$0xf0]  ;;  %v3536_v38 = vor.u32 %v3821_v26, %v3533_v27 }
 0x11e   : > { %v1351_v29 = vmax.f32 %v1266_v12, 0.0  ;;  %v3460_v46 = vor.u32 %v3804_v34, %v3459_v28  ;;  %v3509_v12 = vld [vmem:[#allocation8 + $0x188] sm:$0xf0] }
 0x11f   : > { %2360 = vmatpush.bf16.msrb.mxu1 %v3564_v35  ;;  %2386 = vmatpush.bf16.msrb.mxu3 %v3568_v39  ;;  %v1278_v17 = vpop.f32.mrf.mxu2  ;;  %v3523_v35 = vld [vmem:[#allocation8 + $0x1a0] sm:$0xf]  ;;  %v3820_v39 = vld [vmem:[#allocation8 + $0x1a4] sm:$0xf0]  ;;  %v3512_v16 = vor.u32 %v3815_v11, %v3509_v12 }
 0x120   : > { %v1279_v23 = vadd.f32 %v1278_v17, %v488_v59  ;;  %v3817_v59 = vld [vmem:[#allocation8 + $0x194] sm:$0xf]  ;;  %v489_v17 = vperm.slane %v4314_v6, 6  ;;  %v1391_v6 = vld [vmem:[%s4379_s4] sm:$0x3] }
 0x121   : > { %2348 = vmatpush.bf16.msrb.mxu0 %v3492_v47  ;;  %2374 = vmatpush.bf16.msrb.mxu2 %v3496_v3  ;;  %v1291_v24 = vpop.f32.mrf.mxu3  ;;  %v1254_v31 = vpop.f32.mrf.mxu0  ;;  %v3524_v47 = vor.u32 %v3820_v39, %v3523_v35  ;;  %v3464_v3 = vor.u32 %v3803_v40, %v3461_v41  ;;  %v3440_v11 = vld [vmem:[%s4381_s6 + $0x2] sm:$0x3] }
 0x122   : > { %v1292_v30 = vadd.f32 %v1291_v24, %v1279_v23 }
 0x123   : > { %2361 = vmatpush.bf16.msrb.mxu1 %v3556_v48  ;;  %2387 = vmatpush.bf16.msrb.mxu3 %v3560_v50  ;;  %v1267_v36 = vpop.f32.mrf.mxu1  ;;  %v3451_v48 = vld [vmem:[#allocation8 + $0x110] sm:$0xf]  ;;  %v3528_v50 = vor.u32 %v3819_v43, %v3525_v44  ;;  %v1394_v43 = vperm.slane %v1391_v6, 1 }
 0x124   : > { %v1352_v42 = vmax.f32 %v1292_v30, 0.0 }
 0x125   : > { %2349 = vmatpush.bf16.msrb.mxu0 %v3484_v60  ;;  %2375 = vmatpush.bf16.msrb.mxu2 %v3488_v2  ;;  %v3517_v60 = vld [vmem:[#allocation8 + $0x198] sm:$0xf0]  ;;  %v3800_v2 = vld [vmem:[#allocation8 + $0x104] sm:$0xf0] }
 0x126   : > { %v1357_v45 = vpack.c.bf16 %v1352_v42, %v1351_v29  ;;  %v3520_v5 = vor.u32 %v3817_v59, %v3517_v60 }
 0x127   : > { %2362 = vmatpush.bf16.msrb.mxu1 %v3548_v61  ;;  %2388 = vmatpush.bf16.msrb.mxu3 %v3552_v4  ;;  %v1280_v49 = vpop.f32.mrf.mxu2  ;;  %v3452_v61 = vor.u32 %v3802_v55, %v3451_v48  ;;  %v3456_v4 = vor.u32 %v3801_v53, %v3453_v58 }
 0x128   : > { %v1922_v54 = vunpack.c.l.b16 %v1357_v45  ;;  %v1923_v56 = vunpack.c.h.b16 %v1357_v45 }
 0x129   : > { %2350 = vmatpush.bf16.msrb.mxu0 %v3476_v13  ;;  %2376 = vmatpush.bf16.msrb.mxu2 %v3480_v18  ;;  %v1293_v57 = vpop.f32.mrf.mxu3  ;;  %v3444_v13 = vor.u32 %v3800_v2, %v3443_v1  ;;  %v1648_v1 = vld [vmem:[%s4381_s6] sm:$0x3] }
 0x12a   : > { %v1924_v62 = vpack.c.b16 %v1922_v54, %v1922_v54  ;;  %v1925_v63 = vpack.c.b16 %v1923_v56, %v1923_v56  ;;  %v1650_v2 = vperm.slane %v1648_v1, 0 }
 0x12b   : > { %2363 = vmatpush.bf16.msrb.mxu1 %v3540_v14  ;;  %2389 = vmatpush.bf16.msrb.mxu3 %v3544_v19  ;;  %v3508_v14 = vor.u32 %v3816_v8, %v3507_v7  ;;  %v1651_v8 = vperm.slane %v1648_v1, 1 }
 0x12c   : > { %2096 = vmatmul.bf16.vlgmr.msra.gmra.mxu0 %v1924_v62  ;;  %2109 = vmatmul.bf16.vlgmr.msra.gmra.mxu1 %v1925_v63 }
 0x12d   : > { %2351 = vmatpush.bf16.msrb.mxu0 %v3468_v32  ;;  %2377 = vmatpush.bf16.msrb.mxu2 %v3472_v37 }
 0x12e   : > { %2122 = vmatmul.bf16.vlgmr.msra.gmra.mxu2 %v1924_v62  ;;  %2135 = vmatmul.bf16.vlgmr.msra.gmra.mxu3 %v1925_v63 }
 0x12f   : > { %2364 = vmatpush.bf16.msrb.mxu1 %v3532_v33  ;;  %2390 = vmatpush.bf16.msrb.mxu3 %v3536_v38  ;;  %v1393_v38 = vperm.slane %v1391_v6, 0 }
 0x131   : > { %2352 = vmatpush.bf16.msrb.mxu0 %v3460_v46  ;;  %2378 = vmatpush.bf16.msrb.mxu2 %v3464_v3 }
 0x133   : > { %2365 = vmatpush.bf16.msrb.mxu1 %v3524_v47  ;;  %2391 = vmatpush.bf16.msrb.mxu3 %v3528_v50 }
 0x135   : > { %2353 = vmatpush.bf16.msrb.mxu0 %v3452_v61  ;;  %2379 = vmatpush.bf16.msrb.mxu2 %v3456_v4 }
 0x137   : > { %2366 = vmatpush.bf16.msrb.mxu1 %v3516_v0  ;;  %2392 = vmatpush.bf16.msrb.mxu3 %v3520_v5 }
 0x139   : > { %2354 = vmatpush.bf16.msrb.mxu0 %v3444_v13  ;;  %2380 = vmatpush.bf16.msrb.mxu2 %v3448_v15  ;;  %v1304_v18 = vpop.f32.mrf.mxu0  ;;  %v2176_v13 = vperm.slane %v3440_v11, 0 }
 0x13a   : > { %v1305_v20 = vadd.f32 %v1304_v18, %v489_v17 }
 0x13b   : > { %2367 = vmatpush.bf16.msrb.mxu1 %v3508_v14  ;;  %2393 = vmatpush.bf16.msrb.mxu3 %v3512_v16  ;;  %v1317_v19 = vpop.f32.mrf.mxu1 }
 0x13c   : > { %v1318_v22 = vadd.f32 %v1317_v19, %v1305_v20  ;;  %v3311_v19 = vld [vmem:[%s4379_s4 + $0x2] sm:$0x3] }
 0x13e   : > { %v1353_v28 = vmax.f32 %v1318_v22, 0.0 }
 0x13f   : > { %v1330_v23 = vpop.f32.mrf.mxu2 }
 0x140   : > { %v1331_v24 = vadd.f32 %v1330_v23, %v490_v21  ;;  %v2177_v21 = vperm.slane %v3440_v11, 1  ;;  %v349_v23 = vld [vmem:[%s4275_s21 + $0x10] sm:$0xff] }
 0x141   : > { %v1343_v25 = vpop.f32.mrf.mxu3  ;;  %v1306_v26 = vpop.f32.mrf.mxu0 }
 0x142   : > { %v1344_v29 = vadd.f32 %v1343_v25, %v1331_v24  ;;  %v1917_v25 = vperm.slane %v3311_v19, 0 }
 0x143   : > { %v1319_v27 = vpop.f32.mrf.mxu1 }
 0x144   : > { %v1354_v30 = vmax.f32 %v1344_v29, 0.0 }
 0x146   : > { %v1358_v31 = vpack.c.bf16 %v1354_v30, %v1353_v28 }
 0x147   : > { %v1332_v32 = vpop.f32.mrf.mxu2 }
 0x148   : > { %v2181_v33 = vunpack.c.l.b16 %v1358_v31  ;;  %v2182_v34 = vunpack.c.h.b16 %v1358_v31 }
 0x149   : > { %v1345_v35 = vpop.f32.mrf.mxu3 }
 0x14a   : > { %v2183_v36 = vpack.c.b16 %v2181_v33, %v2181_v33  ;;  %v2184_v37 = vpack.c.b16 %v2182_v34, %v2182_v34  ;;  %v350_v35 = vld [vmem:[%s4275_s21 + $0x18] sm:$0xff]  ;;  %s346_s21 = scalar_lea.vmem [#allocation10], %s2542_s29 }
 0x14b   : > { %s2424_s15 = sshll.u32 %s346_s21, 4  ;;  %s2425_s15 = int_to_ptr.vmem [resolvable:$true] %s2424_s15 }
 0x14c   : > { %2355 = vmatmul.bf16.vlgmr.msrb.gmra.mxu0 %v2183_v36  ;;  %2368 = vmatmul.bf16.vlgmr.msrb.gmra.mxu1 %v2184_v37 }
 0x14d   : > { %2381 = vmatmul.bf16.vlgmr.msrb.gmra.mxu2 %v2183_v36  ;;  %2394 = vmatmul.bf16.vlgmr.msrb.gmra.mxu3 %v2184_v37 }
 0x16d   : > { %v1573_v39 = vpop.f32.mrf.mxu0 }
 0x16e   : > { %v1574_v40 = vadd.f32 %v1573_v39, %v1393_v38  ;;  %v1918_v38 = vperm.slane %v3311_v19, 1 }
 0x16f   : > { %v1586_v41 = vpop.f32.mrf.mxu1 }
 0x170   : > { %v1587_v42 = vadd.f32 %v1586_v41, %v1574_v40 }
 0x173   : > { %v1599_v44 = vpop.f32.mrf.mxu2 }
 0x174   : > { %v1600_v45 = vadd.f32 %v1599_v44, %v1394_v43 }
 0x175   : > { %v1612_v46 = vpop.f32.mrf.mxu3  ;;  %v1575_v47 = vpop.f32.mrf.mxu0 }
 0x176   : > { %v4327_v48 = vadd.f32 %v1612_v46, %v1600_v45 }
 0x177   : > { %v1588_v55 = vpop.f32.mrf.mxu1 }
 0x17b   : > { %v1601_v49 = vpop.f32.mrf.mxu2 }
 0x17d   : > { %v1614_v3 = vpop.f32.mrf.mxu3 }
 0x189   : > { %v1830_v50 = vpop.f32.mrf.mxu0 }
 0x18a   : > { %v1831_v7 = vadd.f32 %v1830_v50, %v1650_v2 }
 0x18b   : > { %v1843_v51 = vpop.f32.mrf.mxu1 }
 0x18c   : > { %v1844_v9 = vadd.f32 %v1843_v51, %v1831_v7 }
 0x18e   : > { %v1873_v12 = vmul.f32 1.442695, %v1844_v9 }
 0x18f   : > { %v1856_v52 = vpop.f32.mrf.mxu2 }
 0x190   : > { %v1857_v10 = vadd.f32 %v1856_v52, %v1651_v8  ;;  %3913 = vpow2.f32 %v1873_v12 }
 0x191   : > { %v1869_v53 = vpop.f32.mrf.mxu3  ;;  %v1832_v54 = vpop.f32.mrf.mxu0 }
 0x192   : > { %v1870_v14 = vadd.f32 %v1869_v53, %v1857_v10 }
 0x193   : > { %v1845_v56 = vpop.f32.mrf.mxu1 }
 0x194   : > { %v1875_v18 = vmul.f32 1.442695, %v1870_v14 }
 0x196   : > { %v3914_v22 = vpop.eup %3913  ;;  %3915 = vpow2.f32 %v1875_v18 }
 0x197   : > { %v1858_v57 = vpop.f32.mrf.mxu2  ;;  %v1877_v28 = vmul.f32 %v3914_v22, %v349_v23 }
 0x199   : > { %v1871_v58 = vpop.f32.mrf.mxu3  ;;  %v1879_v36 = vadd.f32 %v1877_v28, %v1587_v42 }
 0x19c   : > { %v3916_v34 = vpop.eup %3915 }
 0x19d   : > { %v1878_v41 = vmul.f32 %v3916_v34, %v350_v35 }
 0x19f   : > { %v1880_v42 = vadd.f32 %v1878_v41, %v4327_v48 }
 0x1a9   : > { %v2097_v59 = vpop.f32.mrf.mxu0  ;;  %v2110_v60 = vpop.f32.mrf.mxu1 }
 0x1aa   : > { %v2098_v32 = vadd.f32 %v2097_v59, %v1917_v25 }
 0x1ac   : > { %v2111_v39 = vadd.f32 %v2110_v60, %v2098_v32 }
 0x1b1   : > { %v2123_v61 = vpop.f32.mrf.mxu2  ;;  %v2136_v62 = vpop.f32.mrf.mxu3 }
 0x1b2   : > { %v2099_v63 = vpop.f32.mrf.mxu0  ;;  %v2112_v0 = vpop.f32.mrf.mxu1  ;;  %v2124_v46 = vadd.f32 %v2123_v61, %v1918_v38 }
 0x1b4   : > { %v2137_v55 = vadd.f32 %v2136_v62, %v2124_v46 }
 0x1b9   : > { %v2125_v4 = vpop.f32.mrf.mxu2  ;;  %v2138_v5 = vpop.f32.mrf.mxu3 }
 0x1c9   : > { %v2356_v15 = vpop.f32.mrf.mxu0  ;;  %v2369_v16 = vpop.f32.mrf.mxu1 }
 0x1ca   : > { %v2357_v17 = vadd.f32 %v2356_v15, %v2176_v13 }
 0x1cc   : > { %v2370_v20 = vadd.f32 %v2369_v16, %v2357_v17 }
 0x1ce   : > { %v2399_v24 = vmul.f32 1.442695, %v2370_v20 }
 0x1d0   : > { %3917 = vpow2.f32 %v2399_v24  ;;  %v2382_v26 = vpop.f32.mrf.mxu2  ;;  %v2395_v27 = vpop.f32.mrf.mxu3 }
 0x1d1   : > { %v2383_v29 = vadd.f32 %v2382_v26, %v2177_v21  ;;  %v2358_v30 = vpop.f32.mrf.mxu0  ;;  %v2371_v31 = vpop.f32.mrf.mxu1 }
 0x1d3   : > { %v2396_v33 = vadd.f32 %v2395_v27, %v2383_v29 }
 0x1d5   : > { %v2401_v37 = vmul.f32 1.442695, %v2396_v33 }
 0x1d6   : > { %v3918_v6 = vpop.eup %3917 }
 0x1d7   : > { %v2403_v40 = vmul.f32 %v3918_v6, %v1879_v36  ;;  %3919 = vpow2.f32 %v2401_v37 }
 0x1d8   : > { %v2384_v43 = vpop.f32.mrf.mxu2  ;;  %v2397_v44 = vpop.f32.mrf.mxu3 }
 0x1d9   : > { %v2405_v45 = vadd.f32 %v2403_v40, %v2111_v39 }
 0x1db   : > { %2407 = vst [vmem:[%s346_s21] sm:$0xff] %v2405_v45 }
 0x1dd   : > { %v3920_v47 = vpop.eup %3919 }
 0x1de   : > { %v2404_v49 = vmul.f32 %v3920_v47, %v1880_v42 }
 0x1e0   : > { %v2406_v3 = vadd.f32 %v2404_v49, %v2137_v55 }
 0x1e2   : > { %2408 = vst [vmem:[%s346_s21 + $0x8] sm:$0xff] %v2406_v3 }
 0x1e3   : > { %4068 = shalt.err (!%p4065_p9)
}
 0x1e4   : > { %3846 = dma.vmem_to_hbm [thread:$0]  (%p4240_p13), %s2425_s15, 256, %s2427_s28, %s2410_s10  }
 0x1e5 PF: > { %s2438_s17 = sand.u32 1, %s4103_s24   ;;  %p4391_p10 = scmp.ge.s32.totalorder %s4115_s27, 2 }
 0x1e6   : > { %s2439_s20 = scalar_lea.sflag [#allocation4], %s2438_s17 }
 0x1e7   : > { %p3863_p11 = pnand %p4391_p10, %p4245_p4 }
 0x1e9   : > { %p3864_p0 = pneg %p3863_p11 }
 0x1eb   : > { %4098 = dma.done.wait (%p3864_p0), %s2439_s20, 256  }
 0x1ec   : > { %4100 = vsyncadd (%p3864_p0), %s2439_s20, 4294967040  ;;  %p22_p2 = scmp.ge.s32.totalorder %s4220_s11, 4   ;;  %s4392_s24 = smov %s4107_s25 }
 0x1ed   : > { %s4393_s25 = smov %s4111_s26  ;;  %s4394_s26 = smov %s4232_s14 }
 0x1ee   : > { %s4395_s27 = smov %s4220_s11  ;;  %24 = sbr.rel (!%p22_p2) target bundleno = 9 (0x9), region = 109 }
 0x1f3   :  { %2445 = vsyncpa [#allocation3], 1 }
 0x1f4   :  { %2447 = vsyncpa [#allocation3 + $0x1], 1 }
 0x1f5   :  { %2448 = vsyncpa [#allocation6], 1 }
 0x1f6   :  { %2449 = vsyncpa [#allocation9], 1 }
 0x1f7   :  { %2450 = vsyncpa [#allocation4], 1 }
 0x1f8   :  { %2452 = vsyncpa [#allocation4 + $0x1], 1 }

</bundles_post_ra>
